<compile_context>
chip_gen: v5e
topology: v5e:2x2
jax: 0.10.0
libtpu: 0.0.40
codegen_flags: <defaults>
</compile_context>

<pallas_src>
import jax
import jax.numpy as jnp
from jax.experimental import pallas as pl
from jax.experimental.pallas import tpu as pltpu

FEATURE_DIM = 768   # dinov2_vitb14 feature_dim
HIDDEN_DIM = 512
NUM_LABELS = 14
PATCH = 14
LANE = 128          # TPU lane width — pad the class dim to this


def _round_up(x, m):
    return ((x + m - 1) // m) * m


# ----------------------------- Pallas kernel --------------------------------
def mlp_probe_kernel(feat_ref, w1_ref, b1_ref, w2_ref, b2_ref, out_ref):
    # classifier: Dropout (id at eval) -> Linear(768,512) -> ReLU
    #             -> Dropout (id at eval) -> Linear(512, 14 padded to 128)
    # bf16 operands on the MXU, f32 accumulation.
    h = jnp.dot(feat_ref[...], w1_ref[...], preferred_element_type=jnp.float32)
    h = jnp.maximum(h + b1_ref[...], 0.0)                   # bias + ReLU
    logits = jnp.dot(h.astype(w2_ref.dtype), w2_ref[...],
                     preferred_element_type=jnp.float32)
    # NOTE: [block_b, 128] f32 store writes ~9x the useful bytes (14 real
    # classes); negligible at small B — switch to bf16 output for B >= 2048.
    out_ref[...] = (logits + b2_ref[...]).astype(out_ref.dtype)


# --------------------- one-time parameter preprocessing ----------------------
def prepare_head_params(w1, b1, w2, b2):
    """Hoisted preprocessing: do ONCE at init, not per forward call.

    w1: [F, H], b1: [1, H], w2: [H, C], b2: [1, C]  (pre-transposed vs. torch)
    Returns bf16 weights and lane-padded (C -> 128) W2 / b2.
    """
    H, C = w2.shape
    c_pad = _round_up(C, LANE)
    w1_bf = w1.astype(jnp.bfloat16)
    w2_pad = jnp.zeros((H, c_pad), jnp.float32).at[:, :C].set(w2)
    b2_pad = jnp.zeros((1, c_pad), jnp.float32).at[:, :C].set(b2)
    return {
        'w1': w1_bf,                              # [F, H] bf16
        'b1': b1.astype(jnp.float32),             # [1, H] f32
        'w2': w2_pad.astype(jnp.bfloat16),        # [H, 128] bf16
        'b2': b2_pad,                             # [1, 128] f32
    }


# ------------------------------ head wrapper ---------------------------------
def mlp_probe_head(features, w1, b1, w2, b2, *, num_labels=NUM_LABELS):
    """Fused two-layer MLP head: relu(features @ w1 + b1) @ w2 + b2.

    features: [B, F] bf16. w1: [F, H] bf16, b1: [1, H] f32,
    w2: [H, C_pad] bf16, b2: [1, C_pad] f32 (already padded & cast).
    Returns [B, num_labels] f32 logits.
    """
    B, F = features.shape
    H = w1.shape[1]
    C_pad = w2.shape[1]

    # Batch tile: multiple of 16 (bf16 sublane packing), capped at 256
    # (fills the 256-row MXU on v6e/v7x; >=2 blocks only for large batches).
    block_b = min(_round_up(max(B, 1), 16), 256)
    B_pad = _round_up(B, block_b)
    feats = features
    if B_pad != B:
        feats = jnp.pad(feats, ((0, B_pad - B), (0, 0)))

    n_blocks = B_pad // block_b
    # Only shard the batch grid across TensorCores when the per-core batch is
    # large enough to amortize the duplicated weight fetch.
    dim_sem = ("parallel",) if (n_blocks >= 2 and block_b >= 256) else ("arbitrary",)

    # Bytes the pallas_call itself touches (weights fetched once).
    flops = 2 * B_pad * F * H + 2 * B_pad * H * C_pad
    bytes_accessed = (B_pad * F * 2            # features (bf16)
                      + F * H * 2 + H * C_pad * 2   # W1, W2 (bf16, once)
                      + H * 4 + C_pad * 4           # biases (f32, once)
                      + B_pad * C_pad * 4)          # logits out (f32)

    const = lambda i: (0, 0)   # weights/biases: VMEM-resident across the grid
    out_padded = pl.pallas_call(
        mlp_probe_kernel,
        out_shape=jax.ShapeDtypeStruct((B_pad, C_pad), jnp.float32),
        grid=(n_blocks,),
        in_specs=[
            pl.BlockSpec((block_b, F), lambda i: (i, 0)),             # features
            pl.BlockSpec((F, H), const, pipeline_mode=pl.Buffered(1)),      # W1
            pl.BlockSpec((1, H), const, pipeline_mode=pl.Buffered(1)),      # b1
            pl.BlockSpec((H, C_pad), const, pipeline_mode=pl.Buffered(1)),  # W2
            pl.BlockSpec((1, C_pad), const, pipeline_mode=pl.Buffered(1)),  # b2
        ],
        out_specs=pl.BlockSpec((block_b, C_pad), lambda i: (i, 0)),
        compiler_params=pltpu.CompilerParams(
            dimension_semantics=dim_sem,
            vmem_limit_bytes=32 * 1024 * 1024),
        cost_estimate=pl.CostEstimate(
            flops=flops, transcendentals=0, bytes_accessed=bytes_accessed),
    )(feats, w1, b1, w2, b2)

    # Strip batch / class padding (layout plumbing only).
    return out_padded[:B, :num_labels]


# -------------------------- backbone stand-in (glue) -------------------------
def backbone_stub(x, w_patch):
    """Deterministic stand-in for the frozen DINOv2 backbone.

    x: NCHW image [B, 3, H, W] with H, W multiples of 14.
    Returns pooled features [B, FEATURE_DIM] in bf16 (cast fused into the
    epilogue so the head never re-reads an f32 feature tensor).
    """
    B, C, Himg, Wimg = x.shape
    ph, pw = Himg // PATCH, Wimg // PATCH
    patches = x.reshape(B, C, ph, PATCH, pw, PATCH)
    patches = patches.transpose(0, 2, 4, 1, 3, 5).reshape(
        B, ph * pw, C * PATCH * PATCH)
    tokens = jnp.einsum('bnp,pf->bnf', patches, w_patch)   # [B, n_patches, F]
    return tokens.mean(axis=1).astype(jnp.bfloat16)        # pooled, bf16


@jax.jit
def mlp_probe_forward(x, w_patch, head_params):
    features = backbone_stub(x, w_patch)
    return mlp_probe_head(features, head_params['w1'], head_params['b1'],
                          head_params['w2'], head_params['b2'],
                          num_labels=NUM_LABELS)


# ---------------------------------- main -------------------------------------
if __name__ == "__main__":
    key = jax.random.PRNGKey(0)
    k_x, k_p, k_w1, k_b1, k_w2, k_b2 = jax.random.split(key, 6)

    B = 4
    # NCHW image, 28x28 -> 2x2 grid of 14x14 patches.
    x = jax.random.normal(k_x, (B, 3, 28, 28), dtype=jnp.float32)

    w_patch = jax.random.normal(
        k_p, (3 * PATCH * PATCH, FEATURE_DIM), jnp.float32) * 0.02
    w1 = jax.random.normal(k_w1, (FEATURE_DIM, HIDDEN_DIM), jnp.float32) * 0.02
    b1 = jax.random.normal(k_b1, (1, HIDDEN_DIM), jnp.float32) * 0.01
    w2 = jax.random.normal(k_w2, (HIDDEN_DIM, NUM_LABELS), jnp.float32) * 0.02
    b2 = jax.random.normal(k_b2, (1, NUM_LABELS), jnp.float32) * 0.01

    # One-time preprocessing (bf16 cast + lane padding) — outside the forward.
    head_params = prepare_head_params(w1, b1, w2, b2)

    logits = mlp_probe_forward(x, w_patch, head_params)
    jax.block_until_ready(logits)

    # ----------------------- reference checks (plain JAX) --------------------
    # Recompute the stand-in backbone features in f32.
    ph, pw = 28 // PATCH, 28 // PATCH
    patches = x.reshape(B, 3, ph, PATCH, pw, PATCH)
    patches = patches.transpose(0, 2, 4, 1, 3, 5).reshape(
        B, ph * pw, 3 * PATCH * PATCH)
    feats_f32 = jnp.einsum('bnp,pf->bnf', patches, w_patch).mean(axis=1)

    # (1) loose check vs. full-f32 math (bf16 operand casts in the kernel path).
    h_f32 = jnp.maximum(feats_f32 @ w1 + b1, 0.0)
    logits_f32 = h_f32 @ w2 + b2

    # (2) tight check vs. a bf16-operand reference matching the kernel math.
    feats_bf = feats_f32.astype(jnp.bfloat16)
    h_bf = jnp.maximum(
        jnp.dot(feats_bf, w1.astype(jnp.bfloat16),
                preferred_element_type=jnp.float32) + b1, 0.0)
    logits_bf = jnp.dot(h_bf.astype(jnp.bfloat16), w2.astype(jnp.bfloat16),
                        preferred_element_type=jnp.float32) + b2

    assert logits.shape == (B, NUM_LABELS)
    assert jnp.allclose(logits, logits_f32, atol=2e-2, rtol=2e-2)
    assert jnp.allclose(logits, logits_bf, atol=2e-3, rtol=2e-3)

    print("KERNEL_OK")
</pallas_src>

<mosaic_0001>
module attributes {stable_mosaic.version = 11 : i64} {
  func.func @mlp_probe_kernel(%arg0: i32, %arg1: memref<16x768xbf16, #tpu.memory_space<vmem>>, %arg2: memref<768x512xbf16, #tpu.memory_space<vmem>>, %arg3: memref<1x512xf32, #tpu.memory_space<vmem>>, %arg4: memref<512x128xbf16, #tpu.memory_space<vmem>>, %arg5: memref<1x128xf32, #tpu.memory_space<vmem>>, %arg6: memref<16x128xf32, #tpu.memory_space<vmem>>) attributes {dimension_semantics = [#tpu.dimension_semantics<arbitrary>], iteration_bounds = array<i64: 1>, scalar_prefetch = 0 : i64, scratch_operands = 0 : i64, tpu.core_type = #tpu.core_type<tc>, window_params = [{transform_indices = @transform_0, window_bounds = array<i64: 16, 768>}, {pipeline_mode = #tpu.pipeline_mode<synchronous>, transform_indices = @transform_1, window_bounds = array<i64: 768, 512>}, {pipeline_mode = #tpu.pipeline_mode<synchronous>, transform_indices = @transform_2, window_bounds = array<i64: 1, 512>}, {pipeline_mode = #tpu.pipeline_mode<synchronous>, transform_indices = @transform_3, window_bounds = array<i64: 512, 128>}, {pipeline_mode = #tpu.pipeline_mode<synchronous>, transform_indices = @transform_4, window_bounds = array<i64: 1, 128>}, {transform_indices = @transform_5, window_bounds = array<i64: 16, 128>}]} {
    %c0 = arith.constant 0 : index
    %c0_0 = arith.constant 0 : index
    %0 = vector.load %arg1[%c0, %c0_0] : memref<16x768xbf16, #tpu.memory_space<vmem>>, vector<16x768xbf16>
    %c0_1 = arith.constant 0 : index
    %c0_2 = arith.constant 0 : index
    %1 = vector.load %arg2[%c0_1, %c0_2] : memref<768x512xbf16, #tpu.memory_space<vmem>>, vector<768x512xbf16>
    %cst = arith.constant dense<0.000000e+00> : vector<16x512xf32>
    %2 = tpu.matmul %0, %1, %cst {dimension_numbers = #tpu.dot_dimension_numbers<[1], [0], [0], [1], [0, 0, 1, 1], [], []>} : vector<16x768xbf16>, vector<768x512xbf16>, vector<16x512xf32> -> vector<16x512xf32>
    %c0_3 = arith.constant 0 : index
    %c0_4 = arith.constant 0 : index
    %3 = vector.load %arg3[%c0_3, %c0_4] : memref<1x512xf32, #tpu.memory_space<vmem>>, vector<1x512xf32>
    %4 = vector.broadcast %3 : vector<1x512xf32> to vector<16x512xf32>
    %5 = arith.addf %2, %4 : vector<16x512xf32>
    %cst_5 = arith.constant 0.000000e+00 : f32
    %6 = vector.broadcast %cst_5 : f32 to vector<16x512xf32>
    %7 = arith.maximumf %5, %6 : vector<16x512xf32>
    %8 = arith.truncf %7 : vector<16x512xf32> to vector<16x512xbf16>
    %c0_6 = arith.constant 0 : index
    %c0_7 = arith.constant 0 : index
    %9 = vector.load %arg4[%c0_6, %c0_7] : memref<512x128xbf16, #tpu.memory_space<vmem>>, vector<512x128xbf16>
    %cst_8 = arith.constant dense<0.000000e+00> : vector<16x128xf32>
    %10 = tpu.matmul %8, %9, %cst_8 {dimension_numbers = #tpu.dot_dimension_numbers<[1], [0], [0], [1], [0, 0, 1, 1], [], []>} : vector<16x512xbf16>, vector<512x128xbf16>, vector<16x128xf32> -> vector<16x128xf32>
    %c0_9 = arith.constant 0 : index
    %c0_10 = arith.constant 0 : index
    %11 = vector.load %arg5[%c0_9, %c0_10] : memref<1x128xf32, #tpu.memory_space<vmem>>, vector<1x128xf32>
    %12 = vector.broadcast %11 : vector<1x128xf32> to vector<16x128xf32>
    %13 = arith.addf %10, %12 : vector<16x128xf32>
    %c0_11 = arith.constant 0 : index
    %c0_12 = arith.constant 0 : index
    %14 = vector.load %arg6[%c0_11, %c0_12] : memref<16x128xf32, #tpu.memory_space<vmem>>, vector<16x128xf32>
    tpu.vector_store %arg6[%c0_11, %c0_12], %13 {strides = array<i32>} : memref<16x128xf32, #tpu.memory_space<vmem>>, vector<16x128xf32>,
    return
  }
  func.func @transform_0(%arg0: i32) -> (i32, i32) {
    %c0_i32 = arith.constant 0 : i32
    %c0_i32_0 = arith.constant 0 : i32
    return %arg0, %c0_i32 : i32, i32
  }
  func.func @transform_1(%arg0: i32) -> (i32, i32) {
    %c0_i32 = arith.constant 0 : i32
    %c0_i32_0 = arith.constant 0 : i32
    %c0_i32_1 = arith.constant 0 : i32
    return %c0_i32, %c0_i32_0 : i32, i32
  }
  func.func @transform_2(%arg0: i32) -> (i32, i32) {
    %c0_i32 = arith.constant 0 : i32
    %c0_i32_0 = arith.constant 0 : i32
    %c0_i32_1 = arith.constant 0 : i32
    return %c0_i32, %c0_i32_0 : i32, i32
  }
  func.func @transform_3(%arg0: i32) -> (i32, i32) {
    %c0_i32 = arith.constant 0 : i32
    %c0_i32_0 = arith.constant 0 : i32
    %c0_i32_1 = arith.constant 0 : i32
    return %c0_i32, %c0_i32_0 : i32, i32
  }
  func.func @transform_4(%arg0: i32) -> (i32, i32) {
    %c0_i32 = arith.constant 0 : i32
    %c0_i32_0 = arith.constant 0 : i32
    %c0_i32_1 = arith.constant 0 : i32
    return %c0_i32, %c0_i32_0 : i32, i32
  }
  func.func @transform_5(%arg0: i32) -> (i32, i32) {
    %c0_i32 = arith.constant 0 : i32
    %c0_i32_0 = arith.constant 0 : i32
    return %arg0, %c0_i32 : i32, i32
  }
}

</mosaic_0001>

<bundles_post_ra>
// kernel: mlp_probe_forward.1
= control target key start
LH: loop header
LB: loop body
LE: loop exit
PB: predicated region body
PF: predicated region fallthrough
CT: control target
= control target key end

     0   :  { %s4407_s1 = inlined_call_operand.vmem [shape: bf16[768,512], index: 1, kind: input, shape index: {}]   ;;  %s4408_s0 = inlined_call_operand.vmem [shape: bf16[16,768], index: 0, kind: input, shape index: {}]   ;;  %s4409_s2 = inlined_call_operand.vmem [shape: f32[1,512], index: 2, kind: input, shape index: {}]   ;;  %s4410_s3 = inlined_call_operand.vmem [shape: bf16[512,128], index: 3, kind: input, shape index: {}]   ;;  %s4411_s4 = inlined_call_operand.vmem [shape: f32[1,128], index: 4, kind: input, shape index: {}]   ;;  %s4412_s5 = inlined_call_operand.vmem [shape: f32[16,128], index: 5, kind: output, shape index: {}]  }
   0x1   :  { %v2026_v0 = vld [vmem:[%s4407_s1 + $0xe0] sm:$0xf]  ;;  %v2844_v1 = vld [vmem:[%s4407_s1 + $0xec] sm:$0xf0] }
   0x2   :  { %v2154_v2 = vld [vmem:[%s4407_s1 + $0x1e0] sm:$0xf]  ;;  %v2027_v3 = vor.u32 %v2844_v1, %v2026_v0  ;;  %v2876_v4 = vld [vmem:[%s4407_s1 + $0x1ec] sm:$0xf0] }
   0x3   :  { %v2282_v5 = vld [vmem:[%s4407_s1 + $0x2e0] sm:$0xf]  ;;  %v2908_v6 = vld [vmem:[%s4407_s1 + $0x2ec] sm:$0xf0]  ;;  %v2155_v7 = vor.u32 %v2876_v4, %v2154_v2 }
   0x4   :  { %v2283_v8 = vor.u32 %v2908_v6, %v2282_v5  ;;  %v2410_v9 = vld [vmem:[%s4407_s1 + $0x3e0] sm:$0xf]  ;;  %v2940_v10 = vld [vmem:[%s4407_s1 + $0x3ec] sm:$0xf0]  ;;  %1218 = vmatpush.bf16.msra.mxu0 %v2027_v3 }
   0x5   :  { %v2010_v11 = vld [vmem:[%s4407_s1 + $0xc0] sm:$0xf]  ;;  %v2411_v12 = vor.u32 %v2940_v10, %v2410_v9  ;;  %v2840_v13 = vld [vmem:[%s4407_s1 + $0xcc] sm:$0xf0]  ;;  %1232 = vmatpush.bf16.msra.mxu1 %v2155_v7 }
   0x6   :  { %v2138_v14 = vld [vmem:[%s4407_s1 + $0x1c0] sm:$0xf]  ;;  %v2872_v15 = vld [vmem:[%s4407_s1 + $0x1cc] sm:$0xf0]  ;;  %1246 = vmatpush.bf16.msra.mxu2 %v2283_v8  ;;  %v2011_v16 = vor.u32 %v2840_v13, %v2010_v11 }
   0x7   :  { %v2139_v17 = vor.u32 %v2872_v15, %v2138_v14  ;;  %v2266_v18 = vld [vmem:[%s4407_s1 + $0x2c0] sm:$0xf]  ;;  %v2904_v19 = vld [vmem:[%s4407_s1 + $0x2cc] sm:$0xf0]  ;;  %1260 = vmatpush.bf16.msra.mxu3 %v2411_v12 }
   0x8   :  { %v2394_v20 = vld [vmem:[%s4407_s1 + $0x3c0] sm:$0xf]  ;;  %v2267_v21 = vor.u32 %v2904_v19, %v2266_v18  ;;  %v2936_v22 = vld [vmem:[%s4407_s1 + $0x3cc] sm:$0xf0]  ;;  %1219 = vmatpush.bf16.msra.mxu0 %v2011_v16 }
   0x9   :  { %v1994_v23 = vld [vmem:[%s4407_s1 + $0xa0] sm:$0xf]  ;;  %v2836_v24 = vld [vmem:[%s4407_s1 + $0xac] sm:$0xf0]  ;;  %v2395_v25 = vor.u32 %v2936_v22, %v2394_v20  ;;  %1233 = vmatpush.bf16.msra.mxu1 %v2139_v17 }
   0xa   :  { %v2122_v26 = vld [vmem:[%s4407_s1 + $0x1a0] sm:$0xf]  ;;  %v2868_v27 = vld [vmem:[%s4407_s1 + $0x1ac] sm:$0xf0]  ;;  %v1995_v29 = vor.u32 %v2836_v24, %v1994_v23  ;;  %1247 = vmatpush.bf16.msra.mxu2 %v2267_v21 }
   0xb   :  { %v2250_v28 = vld [vmem:[%s4407_s1 + $0x2a0] sm:$0xf]  ;;  %v2900_v30 = vld [vmem:[%s4407_s1 + $0x2ac] sm:$0xf0]  ;;  %v2123_v33 = vor.u32 %v2868_v27, %v2122_v26  ;;  %1261 = vmatpush.bf16.msra.mxu3 %v2395_v25 }
   0xc   :  { %v2378_v31 = vld [vmem:[%s4407_s1 + $0x3a0] sm:$0xf]  ;;  %v2932_v32 = vld [vmem:[%s4407_s1 + $0x3ac] sm:$0xf0]  ;;  %v2251_v34 = vor.u32 %v2900_v30, %v2250_v28  ;;  %1220 = vmatpush.bf16.msra.mxu0 %v1995_v29 }
   0xd   :  { %v1978_v35 = vld [vmem:[%s4407_s1 + $0x80] sm:$0xf]  ;;  %v2832_v36 = vld [vmem:[%s4407_s1 + $0x8c] sm:$0xf0]  ;;  %v2379_v38 = vor.u32 %v2932_v32, %v2378_v31  ;;  %1234 = vmatpush.bf16.msra.mxu1 %v2123_v33  ;;  %v2842_v33 = vld [vmem:[%s4407_s1 + $0xe4] sm:$0xf] }
   0xe   :  { %v2106_v37 = vld [vmem:[%s4407_s1 + $0x180] sm:$0xf]  ;;  %v2864_v39 = vld [vmem:[%s4407_s1 + $0x18c] sm:$0xf0]  ;;  %v1979_v44 = vor.u32 %v2832_v36, %v1978_v35  ;;  %1248 = vmatpush.bf16.msra.mxu2 %v2251_v34  ;;  %v2028_v34 = vld [vmem:[%s4407_s1 + $0xf0] sm:$0xf0] }
   0xf   :  { %v2234_v40 = vld [vmem:[%s4407_s1 + $0x280] sm:$0xf]  ;;  %v2896_v41 = vld [vmem:[%s4407_s1 + $0x28c] sm:$0xf0]  ;;  %v2107_v45 = vor.u32 %v2864_v39, %v2106_v37  ;;  %1262 = vmatpush.bf16.msra.mxu3 %v2379_v38  ;;  %v2874_v37 = vld [vmem:[%s4407_s1 + $0x1e4] sm:$0xf] }
  0x10   :  { %v2362_v42 = vld [vmem:[%s4407_s1 + $0x380] sm:$0xf]  ;;  %v2928_v43 = vld [vmem:[%s4407_s1 + $0x38c] sm:$0xf0]  ;;  %v2235_v46 = vor.u32 %v2896_v41, %v2234_v40  ;;  %1221 = vmatpush.bf16.msra.mxu0 %v1979_v44  ;;  %v2156_v38 = vld [vmem:[%s4407_s1 + $0x1f0] sm:$0xf0] }
  0x11   :  { %v1962_v47 = vld [vmem:[%s4407_s1 + $0x60] sm:$0xf]  ;;  %v2828_v48 = vld [vmem:[%s4407_s1 + $0x6c] sm:$0xf0]  ;;  %v2363_v50 = vor.u32 %v2928_v43, %v2362_v42  ;;  %1235 = vmatpush.bf16.msra.mxu1 %v2107_v45  ;;  %v2031_v43 = vor.u32 %v2842_v33, %v2028_v34  ;;  %v1964_v33 = vld [vmem:[%s4407_s1 + $0x70] sm:$0xf0] }
  0x12   :  { %v2090_v49 = vld [vmem:[%s4407_s1 + $0x160] sm:$0xf]  ;;  %v2860_v51 = vld [vmem:[%s4407_s1 + $0x16c] sm:$0xf0]  ;;  %v1963_v56 = vor.u32 %v2828_v48, %v1962_v47  ;;  %1249 = vmatpush.bf16.msra.mxu2 %v2235_v46  ;;  %v2159_v47 = vor.u32 %v2874_v37, %v2156_v38  ;;  %v2838_v48 = vld [vmem:[%s4407_s1 + $0xc4] sm:$0xf] }
  0x13   :  { %v2218_v52 = vld [vmem:[%s4407_s1 + $0x260] sm:$0xf]  ;;  %v2892_v53 = vld [vmem:[%s4407_s1 + $0x26c] sm:$0xf0]  ;;  %v2091_v57 = vor.u32 %v2860_v51, %v2090_v49  ;;  %1263 = vmatpush.bf16.msra.mxu3 %v2363_v50  ;;  %v2012_v49 = vld [vmem:[%s4407_s1 + $0xd0] sm:$0xf0] }
  0x14   :  { %v2346_v54 = vld [vmem:[%s4407_s1 + $0x360] sm:$0xf]  ;;  %v2924_v55 = vld [vmem:[%s4407_s1 + $0x36c] sm:$0xf0]  ;;  %v2219_v58 = vor.u32 %v2892_v53, %v2218_v52  ;;  %1222 = vmatpush.bf16.msra.mxu0 %v1963_v56  ;;  %v2870_v50 = vld [vmem:[%s4407_s1 + $0x1c4] sm:$0xf] }
  0x15   :  { %v1946_v59 = vld [vmem:[%s4407_s1 + $0x40] sm:$0xf]  ;;  %v2824_v60 = vld [vmem:[%s4407_s1 + $0x4c] sm:$0xf0]  ;;  %v2347_v62 = vor.u32 %v2924_v55, %v2346_v54  ;;  %1236 = vmatpush.bf16.msra.mxu1 %v2091_v57  ;;  %v2140_v51 = vld [vmem:[%s4407_s1 + $0x1d0] sm:$0xf0] }
  0x16   :  { %v2074_v61 = vld [vmem:[%s4407_s1 + $0x140] sm:$0xf]  ;;  %v2856_v63 = vld [vmem:[%s4407_s1 + $0x14c] sm:$0xf0]  ;;  %v1947_v4 = vor.u32 %v2824_v60, %v1946_v59  ;;  %1250 = vmatpush.bf16.msra.mxu2 %v2219_v58  ;;  %v2811_v53 = vld [vmem:[%s4408_s0 + $0x14] sm:$0xf0]  ;;  %v2015_v59 = vor.u32 %v2838_v48, %v2012_v49 }
  0x17   :  { %v2202_v0 = vld [vmem:[%s4407_s1 + $0x240] sm:$0xf]  ;;  %v2888_v1 = vld [vmem:[%s4407_s1 + $0x24c] sm:$0xf0]  ;;  %v2075_v5 = vor.u32 %v2856_v63, %v2074_v61  ;;  %1264 = vmatpush.bf16.msra.mxu3 %v2347_v62  ;;  %v2834_v62 = vld [vmem:[%s4407_s1 + $0xa4] sm:$0xf]  ;;  %v2143_v63 = vor.u32 %v2870_v50, %v2140_v51 }
  0x18   :  { %v2330_v2 = vld [vmem:[%s4407_s1 + $0x340] sm:$0xf]  ;;  %v2920_v3 = vld [vmem:[%s4407_s1 + $0x34c] sm:$0xf0]  ;;  %v2203_v6 = vor.u32 %v2888_v1, %v2202_v0  ;;  %1223 = vmatpush.bf16.msra.mxu0 %v1947_v4  ;;  %v1996_v0 = vld [vmem:[%s4407_s1 + $0xb0] sm:$0xf0] }
  0x19   :  { %v1930_v7 = vld [vmem:[%s4407_s1 + $0x20] sm:$0xf]  ;;  %v2820_v8 = vld [vmem:[%s4407_s1 + $0x2c] sm:$0xf0]  ;;  %v2331_v10 = vor.u32 %v2920_v3, %v2330_v2  ;;  %1237 = vmatpush.bf16.msra.mxu1 %v2075_v5  ;;  %v2808_v1 = vld [vmem:[%s4408_s0 + $0x4] sm:$0xf] }
  0x1a   :  { %v2058_v9 = vld [vmem:[%s4407_s1 + $0x120] sm:$0xf]  ;;  %v2852_v11 = vld [vmem:[%s4407_s1 + $0x12c] sm:$0xf0]  ;;  %v1931_v16 = vor.u32 %v2820_v8, %v1930_v7  ;;  %1251 = vmatpush.bf16.msra.mxu2 %v2203_v6  ;;  %v1892_v2 = vld [vmem:[%s4408_s0 + $0x18] sm:$0xf0] }
  0x1b   :  { %v2186_v12 = vld [vmem:[%s4407_s1 + $0x220] sm:$0xf]  ;;  %v2884_v13 = vld [vmem:[%s4407_s1 + $0x22c] sm:$0xf0]  ;;  %v2059_v19 = vor.u32 %v2852_v11, %v2058_v9  ;;  %1265 = vmatpush.bf16.msra.mxu3 %v2331_v10  ;;  %v2866_v3 = vld [vmem:[%s4407_s1 + $0x1a4] sm:$0xf]  ;;  %v3351_v6 = vor.u32 %v2808_v1, %v1892_v2 }
  0x1c   :  { %v2314_v14 = vld [vmem:[%s4407_s1 + $0x320] sm:$0xf]  ;;  %v2916_v15 = vld [vmem:[%s4407_s1 + $0x32c] sm:$0xf0]  ;;  %v2187_v20 = vor.u32 %v2884_v13, %v2186_v12  ;;  %1224 = vmatpush.bf16.msra.mxu0 %v1931_v16  ;;  %v2124_v4 = vld [vmem:[%s4407_s1 + $0x1b0] sm:$0xf0]  ;;  %v1999_v12 = vor.u32 %v2834_v62, %v1996_v0 }
  0x1d   :  { %v1914_v17 = vld [vmem:[%s4407_s1] sm:$0xf]  ;;  %v2816_v18 = vld [vmem:[%s4407_s1 + $0xc] sm:$0xf0]  ;;  %v2315_v24 = vor.u32 %v2916_v15, %v2314_v14  ;;  %1238 = vmatpush.bf16.msra.mxu1 %v2059_v19  ;;  %v2830_v13 = vld [vmem:[%s4407_s1 + $0x84] sm:$0xf]  ;;  %v2127_v16 = vor.u32 %v2866_v3, %v2124_v4 }
  0x1e   :  { %v2042_v21 = vld [vmem:[%s4407_s1 + $0x100] sm:$0xf]  ;;  %v2848_v22 = vld [vmem:[%s4407_s1 + $0x10c] sm:$0xf0]  ;;  %v1915_v31 = vor.u32 %v2816_v18, %v1914_v17  ;;  %1252 = vmatpush.bf16.msra.mxu2 %v2187_v20  ;;  %v1980_v14 = vld [vmem:[%s4407_s1 + $0x90] sm:$0xf0] }
  0x1f   :  { %v2170_v23 = vld [vmem:[%s4407_s1 + $0x200] sm:$0xf]  ;;  %v2880_v25 = vld [vmem:[%s4407_s1 + $0x20c] sm:$0xf0]  ;;  %v2043_v35 = vor.u32 %v2848_v22, %v2042_v21  ;;  %1266 = vmatpush.bf16.msra.mxu3 %v2315_v24  ;;  %v1898_v15 = vld [vmem:[%s4408_s0 + $0x8] sm:$0xf] }
  0x20   :  { %v2298_v26 = vld [vmem:[%s4407_s1 + $0x300] sm:$0xf]  ;;  %v2912_v27 = vld [vmem:[%s4407_s1 + $0x30c] sm:$0xf0]  ;;  %v2171_v36 = vor.u32 %v2880_v25, %v2170_v23  ;;  %1225 = vmatpush.bf16.msra.mxu0 %v1915_v31  ;;  %v2809_v18 = vld [vmem:[%s4408_s0 + $0xc] sm:$0xf] }
  0x21   :  { %v2538_v28 = vld [vmem:[%s4407_s1 + $0x4e0] sm:$0xf]  ;;  %v2972_v29 = vld [vmem:[%s4407_s1 + $0x4ec] sm:$0xf0]  ;;  %v2299_v39 = vor.u32 %v2912_v27, %v2298_v26  ;;  %1239 = vmatpush.bf16.msra.mxu1 %v2043_v35  ;;  %v1900_v19 = vld [vmem:[%s4408_s0 + $0x20] sm:$0xf0]  ;;  %v1983_v26 = vor.u32 %v2830_v13, %v1980_v14 }
  0x22   :  { %v2666_v30 = vld [vmem:[%s4407_s1 + $0x5e0] sm:$0xf]  ;;  %v3004_v32 = vld [vmem:[%s4407_s1 + $0x5ec] sm:$0xf0]  ;;  %v2539_v40 = vor.u32 %v2972_v29, %v2538_v28  ;;  %1253 = vmatpush.bf16.msra.mxu2 %v2171_v36  ;;  %v2862_v20 = vld [vmem:[%s4407_s1 + $0x184] sm:$0xf]  ;;  %v3389_v23 = vor.u32 %v2809_v18, %v1900_v19 }
  0x23   :  { %v2522_v41 = vld [vmem:[%s4407_s1 + $0x4c0] sm:$0xf]  ;;  %v2667_v42 = vor.u32 %v3004_v32, %v2666_v30  ;;  %v2968_v44 = vld [vmem:[%s4407_s1 + $0x4cc] sm:$0xf0]  ;;  %1267 = vmatpush.bf16.msra.mxu3 %v2299_v39  ;;  %v2108_v21 = vld [vmem:[%s4407_s1 + $0x190] sm:$0xf0] }
  0x24   :  { %v2650_v45 = vld [vmem:[%s4407_s1 + $0x5c0] sm:$0xf]  ;;  %v3000_v46 = vld [vmem:[%s4407_s1 + $0x5cc] sm:$0xf0]  ;;  %1274 = vmatpush.bf16.msrb.mxu0 %v2539_v40  ;;  %v2523_v54 = vor.u32 %v2968_v44, %v2522_v41  ;;  %1240 = vmatmul.bf16.vlgmr.msra.gmra.mxu1 %v3351_v6  ;;  %v2111_v30 = vor.u32 %v2862_v20, %v2108_v21  ;;  %v2826_v32 = vld [vmem:[%s4407_s1 + $0x64] sm:$0xf] }
  0x25   :  { %v1890_v52 = vld [vmem:[%s4408_s0] sm:$0xf]  ;;  %v2964_v56 = vld [vmem:[%s4407_s1 + $0x4ac] sm:$0xf0]  ;;  %1288 = vmatpush.bf16.msrb.mxu1 %v2667_v42  ;;  %v2651_v58 = vor.u32 %v3000_v46, %v2650_v45  ;;  %v2858_v34 = vld [vmem:[%s4407_s1 + $0x164] sm:$0xf]  ;;  %v1967_v38 = vor.u32 %v2826_v32, %v1964_v33 }
  0x26   :  { %v2506_v55 = vld [vmem:[%s4407_s1 + $0x4a0] sm:$0xf]  ;;  %v3321_v57 = vor.u32 %v2811_v53, %v1890_v52  ;;  %1302 = vmatpush.bf16.msrb.mxu2 %v2031_v43  ;;  %v2996_v61 = vld [vmem:[%s4407_s1 + $0x5ac] sm:$0xf0]  ;;  %v2092_v35 = vld [vmem:[%s4407_s1 + $0x170] sm:$0xf0]  ;;  %1268 = vmatmul.bf16.vlgmr.msra.gmra.mxu3 %v3389_v23 }
  0x27   :  { %v2634_v60 = vld [vmem:[%s4407_s1 + $0x5a0] sm:$0xf]  ;;  %1316 = vmatpush.bf16.msrb.mxu3 %v2159_v47  ;;  %v2507_v7 = vor.u32 %v2964_v56, %v2506_v55  ;;  %v2960_v8 = vld [vmem:[%s4407_s1 + $0x48c] sm:$0xf0]  ;;  %v2095_v42 = vor.u32 %v2858_v34, %v2092_v35  ;;  %v2822_v44 = vld [vmem:[%s4407_s1 + $0x44] sm:$0xf] }
  0x28   :  { %1226 = vmatmul.bf16.vlgmr.msra.gmra.mxu0 %v3321_v57  ;;  %v2490_v5 = vld [vmem:[%s4407_s1 + $0x480] sm:$0xf]  ;;  %v2992_v10 = vld [vmem:[%s4407_s1 + $0x58c] sm:$0xf0]  ;;  %v2635_v11 = vor.u32 %v2996_v61, %v2634_v60  ;;  %v1948_v45 = vld [vmem:[%s4407_s1 + $0x50] sm:$0xf0] }
  0x29   :  { %1275 = vmatpush.bf16.msrb.mxu0 %v2523_v54  ;;  %v2618_v9 = vld [vmem:[%s4407_s1 + $0x580] sm:$0xf]  ;;  %1289 = vmatpush.bf16.msrb.mxu1 %v2651_v58  ;;  %v2491_v24 = vor.u32 %v2960_v8, %v2490_v5  ;;  %v2956_v28 = vld [vmem:[%s4407_s1 + $0x46c] sm:$0xf0]  ;;  %v2854_v46 = vld [vmem:[%s4407_s1 + $0x144] sm:$0xf]  ;;  %v1951_v50 = vor.u32 %v2822_v44, %v1948_v45 }
  0x2a   :  { %1303 = vmatpush.bf16.msrb.mxu2 %v2015_v59  ;;  %v2812_v17 = vld [vmem:[%s4408_s0 + $0x1c] sm:$0xf0]  ;;  %v2619_v25 = vor.u32 %v2992_v10, %v2618_v9  ;;  %v2988_v31 = vld [vmem:[%s4407_s1 + $0x56c] sm:$0xf0]  ;;  %v2076_v47 = vld [vmem:[%s4407_s1 + $0x150] sm:$0xf0] }
  0x2b   :  { %1317 = vmatpush.bf16.msrb.mxu3 %v2143_v63  ;;  %v3387_v22 = vor.u32 %v2812_v17, %v1898_v15  ;;  %v2474_v27 = vld [vmem:[%s4407_s1 + $0x460] sm:$0xf]  ;;  %v2952_v40 = vld [vmem:[%s4407_s1 + $0x44c] sm:$0xf0]  ;;  %v2079_v54 = vor.u32 %v2854_v46, %v2076_v47  ;;  %v2818_v56 = vld [vmem:[%s4407_s1 + $0x24] sm:$0xf] }
  0x2c   :  { %v2602_v29 = vld [vmem:[%s4407_s1 + $0x560] sm:$0xf]  ;;  %v2475_v36 = vor.u32 %v2956_v28, %v2474_v27  ;;  %v2984_v43 = vld [vmem:[%s4407_s1 + $0x54c] sm:$0xf0]  ;;  %v1932_v58 = vld [vmem:[%s4407_s1 + $0x30] sm:$0xf0] }
  0x2d   :  { %1276 = vmatpush.bf16.msrb.mxu0 %v2507_v7  ;;  %1290 = vmatpush.bf16.msrb.mxu1 %v2635_v11  ;;  %v2603_v37 = vor.u32 %v2988_v31, %v2602_v29  ;;  %v2458_v39 = vld [vmem:[%s4407_s1 + $0x440] sm:$0xf]  ;;  %v2948_v52 = vld [vmem:[%s4407_s1 + $0x42c] sm:$0xf0]  ;;  %v2850_v59 = vld [vmem:[%s4407_s1 + $0x124] sm:$0xf]  ;;  %v1935_v2 = vor.u32 %v2818_v56, %v1932_v58 }
  0x2e   :  { %1304 = vmatpush.bf16.msrb.mxu2 %v1999_v12  ;;  %v2586_v41 = vld [vmem:[%s4407_s1 + $0x540] sm:$0xf]  ;;  %v2459_v48 = vor.u32 %v2952_v40, %v2458_v39  ;;  %v2980_v55 = vld [vmem:[%s4407_s1 + $0x52c] sm:$0xf0]  ;;  %v2060_v60 = vld [vmem:[%s4407_s1 + $0x130] sm:$0xf0] }
  0x2f   :  { %1318 = vmatpush.bf16.msrb.mxu3 %v2127_v16  ;;  %1254 = vmatmul.bf16.vlgmr.msra.gmra.mxu2 %v3387_v22  ;;  %v2587_v49 = vor.u32 %v2984_v43, %v2586_v41  ;;  %v2442_v51 = vld [vmem:[%s4407_s1 + $0x420] sm:$0xf]  ;;  %v2944_v63 = vld [vmem:[%s4407_s1 + $0x40c] sm:$0xf0]  ;;  %v2814_v4 = vld [vmem:[%s4407_s1 + $0x4] sm:$0xf]  ;;  %v2063_v7 = vor.u32 %v2850_v59, %v2060_v60 }
  0x30   :  { %v2570_v53 = vld [vmem:[%s4407_s1 + $0x520] sm:$0xf]  ;;  %v2443_v61 = vor.u32 %v2948_v52, %v2442_v51  ;;  %v2976_v3 = vld [vmem:[%s4407_s1 + $0x50c] sm:$0xf0]  ;;  %v1916_v5 = vld [vmem:[%s4407_s1 + $0x10] sm:$0xf0] }
  0x31   :  { %1277 = vmatpush.bf16.msrb.mxu0 %v2491_v24  ;;  %1291 = vmatpush.bf16.msrb.mxu1 %v2619_v25  ;;  %v2426_v62 = vld [vmem:[%s4407_s1 + $0x400] sm:$0xf]  ;;  %v2571_v1 = vor.u32 %v2980_v55, %v2570_v53  ;;  %v2846_v8 = vld [vmem:[%s4407_s1 + $0x104] sm:$0xf]  ;;  %v2044_v9 = vld [vmem:[%s4407_s1 + $0x110] sm:$0xf0]  ;;  %v1919_v19 = vor.u32 %v2814_v4, %v1916_v5 }
  0x32   :  { %1305 = vmatpush.bf16.msrb.mxu2 %v1983_v26  ;;  %v2554_v0 = vld [vmem:[%s4407_s1 + $0x500] sm:$0xf]  ;;  %v2906_v10 = vld [vmem:[%s4407_s1 + $0x2e4] sm:$0xf]  ;;  %v2284_v11 = vld [vmem:[%s4407_s1 + $0x2f0] sm:$0xf0]  ;;  %v2427_v14 = vor.u32 %v2944_v63, %v2426_v62  ;;  %v2047_v25 = vor.u32 %v2846_v8, %v2044_v9 }
  0x33   :  { %1319 = vmatpush.bf16.msrb.mxu3 %v2111_v30  ;;  %v2938_v12 = vld [vmem:[%s4407_s1 + $0x3e4] sm:$0xf]  ;;  %v2412_v13 = vld [vmem:[%s4407_s1 + $0x3f0] sm:$0xf0]  ;;  %v2555_v18 = vor.u32 %v2976_v3, %v2554_v0  ;;  %v1906_v21 = vld [vmem:[%s4408_s0 + $0x10] sm:$0xf]  ;;  %v2287_v26 = vor.u32 %v2906_v10, %v2284_v11 }
  0x34   :  { %v2970_v15 = vld [vmem:[%s4407_s1 + $0x4e4] sm:$0xf]  ;;  %v2540_v16 = vld [vmem:[%s4407_s1 + $0x4f0] sm:$0xf0]  ;;  %v2813_v24 = vld [vmem:[%s4408_s0 + $0x24] sm:$0xf0]  ;;  %v2415_v29 = vor.u32 %v2938_v12, %v2412_v13 }
  0x35   :  { %1278 = vmatpush.bf16.msrb.mxu0 %v2475_v36  ;;  %1292 = vmatpush.bf16.msrb.mxu1 %v2603_v37  ;;  %v3002_v17 = vld [vmem:[%s4407_s1 + $0x5e4] sm:$0xf]  ;;  %v2668_v20 = vld [vmem:[%s4407_s1 + $0x5f0] sm:$0xf0]  ;;  %v1908_v28 = vld [vmem:[%s4408_s0 + $0x28] sm:$0xf0]  ;;  %v2543_v30 = vor.u32 %v2970_v15, %v2540_v16  ;;  %v3534_v35 = vor.u32 %v2813_v24, %v1906_v21 }
  0x36   :  { %1306 = vmatpush.bf16.msrb.mxu2 %v1967_v38  ;;  %v2810_v27 = vld [vmem:[%s4408_s0 + $0x14] sm:$0xf]  ;;  %v2902_v31 = vld [vmem:[%s4407_s1 + $0x2c4] sm:$0xf]  ;;  %v2671_v34 = vor.u32 %v3002_v17, %v2668_v20 }
  0x37   :  { %1320 = vmatpush.bf16.msrb.mxu3 %v2095_v42  ;;  %v2268_v32 = vld [vmem:[%s4407_s1 + $0x2d0] sm:$0xf0]  ;;  %v2934_v33 = vld [vmem:[%s4407_s1 + $0x3c4] sm:$0xf]  ;;  %v3545_v39 = vor.u32 %v2810_v27, %v1908_v28 }
  0x38   :  { %v2396_v36 = vld [vmem:[%s4407_s1 + $0x3d0] sm:$0xf0]  ;;  %v2966_v37 = vld [vmem:[%s4407_s1 + $0x4c4] sm:$0xf]  ;;  %v2271_v42 = vor.u32 %v2902_v31, %v2268_v32 }
  0x39   :  { %1279 = vmatpush.bf16.msrb.mxu0 %v2459_v48  ;;  %1293 = vmatpush.bf16.msrb.mxu1 %v2587_v49  ;;  %v2524_v38 = vld [vmem:[%s4407_s1 + $0x4d0] sm:$0xf0]  ;;  %v2998_v40 = vld [vmem:[%s4407_s1 + $0x5c4] sm:$0xf]  ;;  %v2399_v43 = vor.u32 %v2934_v33, %v2396_v36 }
  0x3a   :  { %1307 = vmatpush.bf16.msrb.mxu2 %v1951_v50  ;;  %v2652_v41 = vld [vmem:[%s4407_s1 + $0x5d0] sm:$0xf0]  ;;  %v2527_v44 = vor.u32 %v2966_v37, %v2524_v38  ;;  %v2898_v45 = vld [vmem:[%s4407_s1 + $0x2a4] sm:$0xf] }
  0x3b   :  { %1321 = vmatpush.bf16.msrb.mxu3 %v2079_v54  ;;  %v2252_v46 = vld [vmem:[%s4407_s1 + $0x2b0] sm:$0xf0]  ;;  %v2930_v47 = vld [vmem:[%s4407_s1 + $0x3a4] sm:$0xf]  ;;  %v2655_v48 = vor.u32 %v2998_v40, %v2652_v41 }
  0x3c   :  { %v2380_v49 = vld [vmem:[%s4407_s1 + $0x3b0] sm:$0xf0]  ;;  %v2962_v50 = vld [vmem:[%s4407_s1 + $0x4a4] sm:$0xf]  ;;  %v2255_v54 = vor.u32 %v2898_v45, %v2252_v46 }
  0x3d   :  { %1280 = vmatpush.bf16.msrb.mxu0 %v2443_v61  ;;  %1294 = vmatpush.bf16.msrb.mxu1 %v2571_v1  ;;  %v2508_v51 = vld [vmem:[%s4407_s1 + $0x4b0] sm:$0xf0]  ;;  %v2994_v52 = vld [vmem:[%s4407_s1 + $0x5a4] sm:$0xf]  ;;  %v2383_v55 = vor.u32 %v2930_v47, %v2380_v49 }
  0x3e   :  { %1308 = vmatpush.bf16.msrb.mxu2 %v1935_v2  ;;  %v2636_v53 = vld [vmem:[%s4407_s1 + $0x5b0] sm:$0xf0]  ;;  %v2511_v56 = vor.u32 %v2962_v50, %v2508_v51  ;;  %v2894_v58 = vld [vmem:[%s4407_s1 + $0x284] sm:$0xf] }
  0x3f   :  { %1322 = vmatpush.bf16.msrb.mxu3 %v2063_v7  ;;  %v2236_v59 = vld [vmem:[%s4407_s1 + $0x290] sm:$0xf0]  ;;  %v2926_v60 = vld [vmem:[%s4407_s1 + $0x384] sm:$0xf]  ;;  %v2639_v61 = vor.u32 %v2994_v52, %v2636_v53 }
  0x40   :  { %v2364_v62 = vld [vmem:[%s4407_s1 + $0x390] sm:$0xf0]  ;;  %v2958_v63 = vld [vmem:[%s4407_s1 + $0x484] sm:$0xf]  ;;  %v2239_v3 = vor.u32 %v2894_v58, %v2236_v59  ;;  %v2845_v58 = vld [vmem:[%s4407_s1 + $0xf4] sm:$0xf0] }
  0x41   :  { %1281 = vmatpush.bf16.msrb.mxu0 %v2427_v14  ;;  %1295 = vmatpush.bf16.msrb.mxu1 %v2555_v18  ;;  %v2492_v0 = vld [vmem:[%s4407_s1 + $0x490] sm:$0xf0]  ;;  %v2990_v1 = vld [vmem:[%s4407_s1 + $0x584] sm:$0xf]  ;;  %v2367_v4 = vor.u32 %v2926_v60, %v2364_v62  ;;  %v2162_v59 = vld [vmem:[%s4407_s1 + $0x1e8] sm:$0xf] }
  0x42   :  { %1309 = vmatpush.bf16.msrb.mxu2 %v1919_v19  ;;  %v2620_v2 = vld [vmem:[%s4407_s1 + $0x590] sm:$0xf0]  ;;  %v2495_v5 = vor.u32 %v2958_v63, %v2492_v0  ;;  %v2890_v7 = vld [vmem:[%s4407_s1 + $0x264] sm:$0xf]  ;;  %v2290_v62 = vld [vmem:[%s4407_s1 + $0x2e8] sm:$0xf] }
  0x43   :  { %1323 = vmatpush.bf16.msrb.mxu3 %v2047_v25  ;;  %v2220_v8 = vld [vmem:[%s4407_s1 + $0x270] sm:$0xf0]  ;;  %v2922_v9 = vld [vmem:[%s4407_s1 + $0x364] sm:$0xf]  ;;  %v2623_v10 = vor.u32 %v2990_v1, %v2620_v2  ;;  %v2909_v63 = vld [vmem:[%s4407_s1 + $0x2f4] sm:$0xf0] }
  0x44   :  { %1282 = vmatmul.bf16.vlgmr.msrb.gmra.mxu0 %v3534_v35  ;;  %1296 = vmatmul.bf16.vlgmr.msrb.gmra.mxu1 %v3545_v39  ;;  %v2348_v11 = vld [vmem:[%s4407_s1 + $0x370] sm:$0xf0]  ;;  %v2954_v12 = vld [vmem:[%s4407_s1 + $0x464] sm:$0xf]  ;;  %v2223_v16 = vor.u32 %v2890_v7, %v2220_v8  ;;  %v2418_v2 = vld [vmem:[%s4407_s1 + $0x3e8] sm:$0xf]  ;;  %v2291_v8 = vor.u32 %v2909_v63, %v2290_v62 }
  0x45   :  { %1330 = vmatpush.bf16.msra.mxu0 %v2287_v26  ;;  %1344 = vmatpush.bf16.msra.mxu1 %v2415_v29  ;;  %v2476_v13 = vld [vmem:[%s4407_s1 + $0x470] sm:$0xf0]  ;;  %v2986_v14 = vld [vmem:[%s4407_s1 + $0x564] sm:$0xf]  ;;  %v2351_v17 = vor.u32 %v2922_v9, %v2348_v11  ;;  %v2018_v9 = vld [vmem:[%s4407_s1 + $0xc8] sm:$0xf] }
  0x46   :  { %1358 = vmatpush.bf16.msra.mxu2 %v2543_v30  ;;  %1324 = vmatmul.bf16.vlgmr.msrb.gmra.mxu3 %v3351_v6  ;;  %v2604_v15 = vld [vmem:[%s4407_s1 + $0x570] sm:$0xf0]  ;;  %v2479_v18 = vor.u32 %v2954_v12, %v2476_v13  ;;  %v2886_v19 = vld [vmem:[%s4407_s1 + $0x244] sm:$0xf]  ;;  %v2146_v11 = vld [vmem:[%s4407_s1 + $0x1c8] sm:$0xf] }
  0x47   :  { %1372 = vmatpush.bf16.msra.mxu3 %v2671_v34  ;;  %1310 = vmatmul.bf16.vlgmr.msrb.gmra.mxu2 %v3321_v57  ;;  %v2204_v20 = vld [vmem:[%s4407_s1 + $0x250] sm:$0xf0]  ;;  %v2918_v21 = vld [vmem:[%s4407_s1 + $0x344] sm:$0xf]  ;;  %v2607_v24 = vor.u32 %v2986_v14, %v2604_v15  ;;  %v2873_v13 = vld [vmem:[%s4407_s1 + $0x1d4] sm:$0xf0] }
  0x48   :  { %v2332_v25 = vld [vmem:[%s4407_s1 + $0x350] sm:$0xf0]  ;;  %v2950_v26 = vld [vmem:[%s4407_s1 + $0x444] sm:$0xf]  ;;  %v2207_v30 = vor.u32 %v2886_v19, %v2204_v20  ;;  %v2274_v14 = vld [vmem:[%s4407_s1 + $0x2c8] sm:$0xf]  ;;  %v2147_v19 = vor.u32 %v2873_v13, %v2146_v11 }
  0x49   :  { %1331 = vmatpush.bf16.msra.mxu0 %v2271_v42  ;;  %1345 = vmatpush.bf16.msra.mxu1 %v2399_v43  ;;  %v2460_v27 = vld [vmem:[%s4407_s1 + $0x450] sm:$0xf0]  ;;  %v2982_v28 = vld [vmem:[%s4407_s1 + $0x544] sm:$0xf]  ;;  %v2335_v31 = vor.u32 %v2918_v21, %v2332_v25  ;;  %v2905_v15 = vld [vmem:[%s4407_s1 + $0x2d4] sm:$0xf0] }
  0x4a   :  { %1359 = vmatpush.bf16.msra.mxu2 %v2527_v44  ;;  %v2588_v29 = vld [vmem:[%s4407_s1 + $0x550] sm:$0xf0]  ;;  %v2463_v32 = vor.u32 %v2950_v26, %v2460_v27  ;;  %v2882_v33 = vld [vmem:[%s4407_s1 + $0x224] sm:$0xf]  ;;  %v2275_v20 = vor.u32 %v2905_v15, %v2274_v14  ;;  %v2002_v21 = vld [vmem:[%s4407_s1 + $0xa8] sm:$0xf] }
  0x4b   :  { %1373 = vmatpush.bf16.msra.mxu3 %v2655_v48  ;;  %v2188_v34 = vld [vmem:[%s4407_s1 + $0x230] sm:$0xf0]  ;;  %v2914_v36 = vld [vmem:[%s4407_s1 + $0x324] sm:$0xf]  ;;  %v2591_v37 = vor.u32 %v2982_v28, %v2588_v29  ;;  %v2130_v25 = vld [vmem:[%s4407_s1 + $0x1a8] sm:$0xf] }
  0x4c   :  { %v2316_v38 = vld [vmem:[%s4407_s1 + $0x330] sm:$0xf0]  ;;  %v2946_v40 = vld [vmem:[%s4407_s1 + $0x424] sm:$0xf]  ;;  %v2191_v44 = vor.u32 %v2882_v33, %v2188_v34  ;;  %v2869_v27 = vld [vmem:[%s4407_s1 + $0x1b4] sm:$0xf0] }
  0x4d   :  { %1332 = vmatpush.bf16.msra.mxu0 %v2255_v54  ;;  %1346 = vmatpush.bf16.msra.mxu1 %v2383_v55  ;;  %v2444_v41 = vld [vmem:[%s4407_s1 + $0x430] sm:$0xf0]  ;;  %v2978_v42 = vld [vmem:[%s4407_s1 + $0x524] sm:$0xf]  ;;  %v2319_v47 = vor.u32 %v2914_v36, %v2316_v38  ;;  %v2258_v28 = vld [vmem:[%s4407_s1 + $0x2a8] sm:$0xf]  ;;  %v2131_v33 = vor.u32 %v2869_v27, %v2130_v25 }
  0x4e   :  { %1360 = vmatpush.bf16.msra.mxu2 %v2511_v56  ;;  %v2572_v43 = vld [vmem:[%s4407_s1 + $0x530] sm:$0xf0]  ;;  %v2878_v45 = vld [vmem:[%s4407_s1 + $0x204] sm:$0xf]  ;;  %v2447_v48 = vor.u32 %v2946_v40, %v2444_v41  ;;  %v2034_v56 = vld [vmem:[%s4407_s1 + $0xe8] sm:$0xf] }
  0x4f   :  { %1374 = vmatpush.bf16.msra.mxu3 %v2639_v61  ;;  %v2172_v46 = vld [vmem:[%s4407_s1 + $0x210] sm:$0xf0]  ;;  %v2910_v49 = vld [vmem:[%s4407_s1 + $0x304] sm:$0xf]  ;;  %v2575_v52 = vor.u32 %v2978_v42, %v2572_v43  ;;  %v2877_v61 = vld [vmem:[%s4407_s1 + $0x1f4] sm:$0xf0] }
  0x50   :  { %v2300_v50 = vld [vmem:[%s4407_s1 + $0x310] sm:$0xf0]  ;;  %v2942_v51 = vld [vmem:[%s4407_s1 + $0x404] sm:$0xf]  ;;  %v2175_v60 = vor.u32 %v2878_v45, %v2172_v46  ;;  %v2163_v7 = vor.u32 %v2877_v61, %v2162_v59  ;;  %v2901_v29 = vld [vmem:[%s4407_s1 + $0x2b4] sm:$0xf0] }
  0x51   :  { %1333 = vmatpush.bf16.msra.mxu0 %v2239_v3  ;;  %1347 = vmatpush.bf16.msra.mxu1 %v2367_v4  ;;  %v2428_v53 = vld [vmem:[%s4407_s1 + $0x410] sm:$0xf0]  ;;  %v2974_v54 = vld [vmem:[%s4407_s1 + $0x504] sm:$0xf]  ;;  %v2303_v0 = vor.u32 %v2910_v49, %v2300_v50  ;;  %v2941_v3 = vld [vmem:[%s4407_s1 + $0x3f4] sm:$0xf0]  ;;  %v2259_v34 = vor.u32 %v2901_v29, %v2258_v28 }
  0x52   :  { %1361 = vmatpush.bf16.msra.mxu2 %v2495_v5  ;;  %v2556_v55 = vld [vmem:[%s4407_s1 + $0x510] sm:$0xf0]  ;;  %v2431_v1 = vor.u32 %v2942_v51, %v2428_v53  ;;  %v2035_v5 = vor.u32 %v2845_v58, %v2034_v56  ;;  %v2419_v12 = vor.u32 %v2941_v3, %v2418_v2  ;;  %v1986_v36 = vld [vmem:[%s4407_s1 + $0x88] sm:$0xf]  ;;  %v2865_v41 = vld [vmem:[%s4407_s1 + $0x194] sm:$0xf0] }
  0x53   :  { %1375 = vmatpush.bf16.msra.mxu3 %v2623_v10  ;;  %v2559_v4 = vor.u32 %v2974_v54, %v2556_v55  ;;  %v2841_v10 = vld [vmem:[%s4407_s1 + $0xd4] sm:$0xf0]  ;;  %v2114_v38 = vld [vmem:[%s4407_s1 + $0x188] sm:$0xf] }
  0x54   :  { %v2242_v42 = vld [vmem:[%s4407_s1 + $0x288] sm:$0xf]  ;;  %v2897_v43 = vld [vmem:[%s4407_s1 + $0x294] sm:$0xf0] }
  0x55   :  { %1334 = vmatpush.bf16.msra.mxu0 %v2223_v16  ;;  %1348 = vmatpush.bf16.msra.mxu1 %v2351_v17  ;;  %v2402_v16 = vld [vmem:[%s4407_s1 + $0x3c8] sm:$0xf]  ;;  %v2937_v17 = vld [vmem:[%s4407_s1 + $0x3d4] sm:$0xf0] }
  0x56   :  { %1362 = vmatpush.bf16.msra.mxu2 %v2479_v18  ;;  %v2019_v18 = vor.u32 %v2841_v10, %v2018_v9  ;;  %v2403_v26 = vor.u32 %v2937_v17, %v2402_v16  ;;  %v2929_v45 = vld [vmem:[%s4407_s1 + $0x394] sm:$0xf0]  ;;  %v1970_v49 = vld [vmem:[%s4407_s1 + $0x68] sm:$0xf] }
  0x57   :  { %1376 = vmatpush.bf16.msra.mxu3 %v2607_v24  ;;  %v2837_v24 = vld [vmem:[%s4407_s1 + $0xb4] sm:$0xf0]  ;;  %v2098_v51 = vld [vmem:[%s4407_s1 + $0x168] sm:$0xf] }
  0x58   :  { %v2829_v50 = vld [vmem:[%s4407_s1 + $0x74] sm:$0xf0]  ;;  %v2226_v54 = vld [vmem:[%s4407_s1 + $0x268] sm:$0xf] }
  0x59   :  { %1335 = vmatpush.bf16.msra.mxu0 %v2207_v30  ;;  %1349 = vmatpush.bf16.msra.mxu1 %v2335_v31  ;;  %v2386_v30 = vld [vmem:[%s4407_s1 + $0x3a8] sm:$0xf]  ;;  %v2933_v31 = vld [vmem:[%s4407_s1 + $0x3b4] sm:$0xf0]  ;;  %v1971_v59 = vor.u32 %v2829_v50, %v1970_v49 }
  0x5a   :  { %1363 = vmatpush.bf16.msra.mxu2 %v2463_v32  ;;  %v2003_v32 = vor.u32 %v2837_v24, %v2002_v21  ;;  %v2387_v40 = vor.u32 %v2933_v31, %v2386_v30  ;;  %v2861_v53 = vld [vmem:[%s4407_s1 + $0x174] sm:$0xf0]  ;;  %v2354_v56 = vld [vmem:[%s4407_s1 + $0x368] sm:$0xf] }
  0x5b   :  { %1377 = vmatpush.bf16.msra.mxu3 %v2591_v37  ;;  %v2833_v37 = vld [vmem:[%s4407_s1 + $0x94] sm:$0xf0]  ;;  %v1954_v62 = vld [vmem:[%s4407_s1 + $0x48] sm:$0xf] }
  0x5c   :  { %v1987_v46 = vor.u32 %v2833_v37, %v1986_v36  ;;  %v2893_v55 = vld [vmem:[%s4407_s1 + $0x274] sm:$0xf0]  ;;  %v2210_v3 = vld [vmem:[%s4407_s1 + $0x248] sm:$0xf] }
  0x5d   :  { %1336 = vmatpush.bf16.msra.mxu0 %v2191_v44  ;;  %1350 = vmatpush.bf16.msra.mxu1 %v2319_v47  ;;  %v2370_v44 = vld [vmem:[%s4407_s1 + $0x388] sm:$0xf]  ;;  %v2115_v47 = vor.u32 %v2865_v41, %v2114_v38  ;;  %v2925_v58 = vld [vmem:[%s4407_s1 + $0x374] sm:$0xf0]  ;;  %v2227_v61 = vor.u32 %v2893_v55, %v2226_v54  ;;  %v2843_v41 = vld [vmem:[%s4407_s1 + $0xec] sm:$0xf] }
  0x5e   :  { %1364 = vmatpush.bf16.msra.mxu2 %v2447_v48  ;;  %v2243_v48 = vor.u32 %v2897_v43, %v2242_v42  ;;  %v2825_v63 = vld [vmem:[%s4407_s1 + $0x54] sm:$0xf0]  ;;  %v1938_v11 = vld [vmem:[%s4407_s1 + $0x28] sm:$0xf]  ;;  %v2036_v42 = vld [vmem:[%s4407_s1 + $0xf8] sm:$0xf0] }
  0x5f   :  { %1378 = vmatpush.bf16.msra.mxu3 %v2575_v52  ;;  %v2371_v52 = vor.u32 %v2929_v45, %v2370_v44  ;;  %v2857_v2 = vld [vmem:[%s4407_s1 + $0x154] sm:$0xf0]  ;;  %v2066_v13 = vld [vmem:[%s4407_s1 + $0x128] sm:$0xf]  ;;  %v2875_v45 = vld [vmem:[%s4407_s1 + $0x1ec] sm:$0xf]  ;;  %v2039_v50 = vor.u32 %v2843_v41, %v2036_v42 }
  0x60   :  { %v2853_v15 = vld [vmem:[%s4407_s1 + $0x134] sm:$0xf0]  ;;  %v2194_v16 = vld [vmem:[%s4407_s1 + $0x228] sm:$0xf] }
  0x61   :  { %1337 = vmatpush.bf16.msra.mxu0 %v2175_v60  ;;  %1351 = vmatpush.bf16.msra.mxu1 %v2303_v0  ;;  %v2099_v60 = vor.u32 %v2861_v53, %v2098_v51  ;;  %v2082_v0 = vld [vmem:[%s4407_s1 + $0x148] sm:$0xf]  ;;  %v2885_v17 = vld [vmem:[%s4407_s1 + $0x234] sm:$0xf0]  ;;  %v2067_v25 = vor.u32 %v2853_v15, %v2066_v13 }
  0x62   :  { %1365 = vmatpush.bf16.msra.mxu2 %v2431_v1  ;;  %v2355_v1 = vor.u32 %v2925_v58, %v2354_v56  ;;  %v2083_v9 = vor.u32 %v2857_v2, %v2082_v0  ;;  %v1922_v21 = vld [vmem:[%s4407_s1 + $0x8] sm:$0xf]  ;;  %v2817_v24 = vld [vmem:[%s4407_s1 + $0x14] sm:$0xf0]  ;;  %v2839_v56 = vld [vmem:[%s4407_s1 + $0xcc] sm:$0xf] }
  0x63   :  { %1379 = vmatpush.bf16.msra.mxu3 %v2559_v4  ;;  %v2889_v4 = vld [vmem:[%s4407_s1 + $0x254] sm:$0xf0]  ;;  %v2050_v27 = vld [vmem:[%s4407_s1 + $0x108] sm:$0xf]  ;;  %v1923_v38 = vor.u32 %v2817_v24, %v1922_v21  ;;  %v2020_v58 = vld [vmem:[%s4407_s1 + $0xd8] sm:$0xf0] }
  0x64   :  { %1338 = vmatmul.bf16.vlgmr.msra.gmra.mxu0 %v3387_v22  ;;  %1352 = vmatmul.bf16.vlgmr.msra.gmra.mxu1 %v3389_v23  ;;  %v2211_v10 = vor.u32 %v2889_v4, %v2210_v3  ;;  %v2849_v28 = vld [vmem:[%s4407_s1 + $0x114] sm:$0xf0]  ;;  %v2178_v29 = vld [vmem:[%s4407_s1 + $0x208] sm:$0xf]  ;;  %v2116_v21 = vld [vmem:[%s4407_s1 + $0x198] sm:$0xf0] }
  0x65   :  { %1386 = vmatpush.bf16.msrb.mxu0 %v2035_v5  ;;  %1400 = vmatpush.bf16.msrb.mxu1 %v2163_v7  ;;  %v2338_v5 = vld [vmem:[%s4407_s1 + $0x348] sm:$0xf]  ;;  %v2921_v7 = vld [vmem:[%s4407_s1 + $0x354] sm:$0xf0]  ;;  %v2051_v43 = vor.u32 %v2849_v28, %v2050_v27 }
  0x66   :  { %1414 = vmatpush.bf16.msrb.mxu2 %v2291_v8  ;;  %1380 = vmatmul.bf16.vlgmr.msra.gmra.mxu3 %v3545_v39  ;;  %v1955_v8 = vor.u32 %v2825_v63, %v1954_v62  ;;  %v2339_v14 = vor.u32 %v2921_v7, %v2338_v5  ;;  %v2881_v31 = vld [vmem:[%s4407_s1 + $0x214] sm:$0xf0]  ;;  %v2674_v37 = vld [vmem:[%s4407_s1 + $0x5e8] sm:$0xf]  ;;  %v2023_v63 = vor.u32 %v2839_v56, %v2020_v58  ;;  %v2835_v5 = vld [vmem:[%s4407_s1 + $0xac] sm:$0xf] }
  0x67   :  { %1428 = vmatpush.bf16.msrb.mxu3 %v2419_v12  ;;  %1366 = vmatmul.bf16.vlgmr.msra.gmra.mxu2 %v3534_v35  ;;  %v2821_v12 = vld [vmem:[%s4407_s1 + $0x34] sm:$0xf0]  ;;  %v2179_v44 = vor.u32 %v2881_v31, %v2178_v29  ;;  %v2530_v51 = vld [vmem:[%s4407_s1 + $0x4c8] sm:$0xf]  ;;  %v2004_v7 = vld [vmem:[%s4407_s1 + $0xb8] sm:$0xf0] }
  0x68   :  { %v2973_v36 = vld [vmem:[%s4407_s1 + $0x4f4] sm:$0xf0]  ;;  %v2658_v53 = vld [vmem:[%s4407_s1 + $0x5c8] sm:$0xf] }
  0x69   :  { %1387 = vmatpush.bf16.msrb.mxu0 %v2019_v18  ;;  %1401 = vmatpush.bf16.msrb.mxu1 %v2147_v19  ;;  %v2322_v18 = vld [vmem:[%s4407_s1 + $0x328] sm:$0xf]  ;;  %v2917_v19 = vld [vmem:[%s4407_s1 + $0x334] sm:$0xf0] }
  0x6a   :  { %1415 = vmatpush.bf16.msrb.mxu2 %v2275_v20  ;;  %v1939_v20 = vor.u32 %v2821_v12, %v1938_v11  ;;  %v2323_v30 = vor.u32 %v2917_v19, %v2322_v18  ;;  %v3001_v55 = vld [vmem:[%s4407_s1 + $0x5d4] sm:$0xf0]  ;;  %v2514_v0 = vld [vmem:[%s4407_s1 + $0x4a8] sm:$0xf]  ;;  %v2007_v12 = vor.u32 %v2835_v5, %v2004_v7  ;;  %v2831_v18 = vld [vmem:[%s4407_s1 + $0x8c] sm:$0xf] }
  0x6b   :  { %1429 = vmatpush.bf16.msrb.mxu3 %v2403_v26  ;;  %v2195_v26 = vor.u32 %v2885_v17, %v2194_v16  ;;  %v2659_v62 = vor.u32 %v3001_v55, %v2658_v53  ;;  %v2642_v2 = vld [vmem:[%s4407_s1 + $0x5a8] sm:$0xf]  ;;  %v2997_v4 = vld [vmem:[%s4407_s1 + $0x5b4] sm:$0xf0]  ;;  %v1988_v19 = vld [vmem:[%s4407_s1 + $0x98] sm:$0xf0] }
  0x6c   :  { %v2643_v11 = vor.u32 %v2997_v4, %v2642_v2  ;;  %v2498_v13 = vld [vmem:[%s4407_s1 + $0x488] sm:$0xf]  ;;  %v2993_v17 = vld [vmem:[%s4407_s1 + $0x594] sm:$0xf0]  ;;  %v2815_v7 = vld [vmem:[%s4407_s1 + $0xc] sm:$0xf] }
  0x6d   :  { %1388 = vmatpush.bf16.msrb.mxu0 %v2003_v32  ;;  %1402 = vmatpush.bf16.msrb.mxu1 %v2131_v33  ;;  %v2306_v32 = vld [vmem:[%s4407_s1 + $0x308] sm:$0xf]  ;;  %v2913_v33 = vld [vmem:[%s4407_s1 + $0x314] sm:$0xf0] }
  0x6e   :  { %1416 = vmatpush.bf16.msrb.mxu2 %v2259_v34  ;;  %v2546_v34 = vld [vmem:[%s4407_s1 + $0x4e8] sm:$0xf]  ;;  %v2957_v28 = vld [vmem:[%s4407_s1 + $0x474] sm:$0xf0] }
  0x6f   :  { %1430 = vmatpush.bf16.msrb.mxu3 %v2387_v40  ;;  %v3005_v40 = vld [vmem:[%s4407_s1 + $0x5f4] sm:$0xf0]  ;;  %v2626_v15 = vld [vmem:[%s4407_s1 + $0x588] sm:$0xf] }
  0x70   :  { %v2675_v49 = vor.u32 %v3005_v40, %v2674_v37  ;;  %v2482_v27 = vld [vmem:[%s4407_s1 + $0x468] sm:$0xf]  ;;  %v2989_v31 = vld [vmem:[%s4407_s1 + $0x574] sm:$0xf0] }
  0x71   :  { %1389 = vmatpush.bf16.msrb.mxu0 %v1987_v46  ;;  %1403 = vmatpush.bf16.msrb.mxu1 %v2115_v47  ;;  %v2164_v46 = vld [vmem:[%s4407_s1 + $0x1f8] sm:$0xf0]  ;;  %v2307_v47 = vor.u32 %v2913_v33, %v2306_v32  ;;  %v2610_v29 = vld [vmem:[%s4407_s1 + $0x568] sm:$0xf]  ;;  %v2827_v32 = vld [vmem:[%s4407_s1 + $0x6c] sm:$0xf]  ;;  %v2483_v37 = vor.u32 %v2957_v28, %v2482_v27 }
  0x72   :  { %1417 = vmatpush.bf16.msrb.mxu2 %v2243_v48  ;;  %v2547_v48 = vor.u32 %v2973_v36, %v2546_v34  ;;  %v2167_v54 = vor.u32 %v2875_v45, %v2164_v46  ;;  %v1972_v33 = vld [vmem:[%s4407_s1 + $0x78] sm:$0xf0]  ;;  %v2859_v34 = vld [vmem:[%s4407_s1 + $0x16c] sm:$0xf]  ;;  %v2466_v41 = vld [vmem:[%s4407_s1 + $0x448] sm:$0xf] }
  0x73   :  { %1431 = vmatpush.bf16.msrb.mxu3 %v2371_v52  ;;  %v2969_v52 = vld [vmem:[%s4407_s1 + $0x4d4] sm:$0xf0]  ;;  %v2100_v36 = vld [vmem:[%s4407_s1 + $0x178] sm:$0xf0]  ;;  %v1975_v40 = vor.u32 %v2827_v32, %v1972_v33  ;;  %v2823_v46 = vld [vmem:[%s4407_s1 + $0x4c] sm:$0xf] }
  0x74   :  { %v2953_v42 = vld [vmem:[%s4407_s1 + $0x454] sm:$0xf0]  ;;  %v2450_v53 = vld [vmem:[%s4407_s1 + $0x428] sm:$0xf]  ;;  %v2404_v33 = vld [vmem:[%s4407_s1 + $0x3d8] sm:$0xf0] }
  0x75   :  { %1390 = vmatpush.bf16.msrb.mxu0 %v1971_v59  ;;  %1404 = vmatpush.bf16.msrb.mxu1 %v2099_v60  ;;  %v2871_v59 = vld [vmem:[%s4407_s1 + $0x1cc] sm:$0xf]  ;;  %v2148_v60 = vld [vmem:[%s4407_s1 + $0x1d8] sm:$0xf0]  ;;  %v2985_v45 = vld [vmem:[%s4407_s1 + $0x554] sm:$0xf0] }
  0x76   :  { %1418 = vmatpush.bf16.msrb.mxu2 %v2227_v61  ;;  %v2531_v61 = vor.u32 %v2969_v52, %v2530_v51  ;;  %v2151_v3 = vor.u32 %v2871_v59, %v2148_v60  ;;  %v2578_v55 = vld [vmem:[%s4407_s1 + $0x528] sm:$0xf]  ;;  %v2981_v58 = vld [vmem:[%s4407_s1 + $0x534] sm:$0xf0]  ;;  %v2819_v59 = vld [vmem:[%s4407_s1 + $0x2c] sm:$0xf] }
  0x77   :  { %1432 = vmatpush.bf16.msrb.mxu3 %v2355_v1  ;;  %v2965_v1 = vld [vmem:[%s4407_s1 + $0x4b4] sm:$0xf0]  ;;  %v1940_v60 = vld [vmem:[%s4407_s1 + $0x38] sm:$0xf0]  ;;  %v2579_v2 = vor.u32 %v2981_v58, %v2578_v55  ;;  %v2562_v4 = vld [vmem:[%s4407_s1 + $0x508] sm:$0xf] }
  0x78   :  { %v2977_v5 = vld [vmem:[%s4407_s1 + $0x514] sm:$0xf0]  ;;  %v2244_v55 = vld [vmem:[%s4407_s1 + $0x298] sm:$0xf0] }
  0x79   :  { %1391 = vmatpush.bf16.msrb.mxu0 %v1955_v8  ;;  %1405 = vmatpush.bf16.msrb.mxu1 %v2083_v9  ;;  %v2867_v8 = vld [vmem:[%s4407_s1 + $0x1ac] sm:$0xf]  ;;  %v2132_v9 = vld [vmem:[%s4407_s1 + $0x1b8] sm:$0xf0] }
  0x7a   :  { %1419 = vmatpush.bf16.msrb.mxu2 %v2211_v10  ;;  %v2515_v10 = vor.u32 %v2965_v1, %v2514_v0  ;;  %v2135_v16 = vor.u32 %v2867_v8, %v2132_v9  ;;  %v2434_v0 = vld [vmem:[%s4407_s1 + $0x408] sm:$0xf]  ;;  %v2945_v1 = vld [vmem:[%s4407_s1 + $0x414] sm:$0xf0]  ;;  %v1924_v9 = vld [vmem:[%s4407_s1 + $0x18] sm:$0xf0] }
  0x7b   :  { %1433 = vmatpush.bf16.msrb.mxu3 %v2339_v14  ;;  %v2961_v14 = vld [vmem:[%s4407_s1 + $0x494] sm:$0xf0] }
  0x7c   :  { %v2499_v24 = vor.u32 %v2961_v14, %v2498_v13  ;;  %v2292_v13 = vld [vmem:[%s4407_s1 + $0x2f8] sm:$0xf0]  ;;  %v2939_v14 = vld [vmem:[%s4407_s1 + $0x3ec] sm:$0xf] }
  0x7d   :  { %1392 = vmatpush.bf16.msrb.mxu0 %v1939_v20  ;;  %1406 = vmatpush.bf16.msrb.mxu1 %v2067_v25  ;;  %v2863_v20 = vld [vmem:[%s4407_s1 + $0x18c] sm:$0xf]  ;;  %v2627_v25 = vor.u32 %v2993_v17, %v2626_v15  ;;  %v2435_v15 = vor.u32 %v2945_v1, %v2434_v0 }
  0x7e   :  { %1420 = vmatpush.bf16.msrb.mxu2 %v2195_v26  ;;  %v1991_v26 = vor.u32 %v2831_v18, %v1988_v19  ;;  %v2971_v17 = vld [vmem:[%s4407_s1 + $0x4ec] sm:$0xf]  ;;  %v2548_v18 = vld [vmem:[%s4407_s1 + $0x4f8] sm:$0xf0]  ;;  %v2563_v19 = vor.u32 %v2977_v5, %v2562_v4 }
  0x7f   :  { %1434 = vmatpush.bf16.msrb.mxu3 %v2323_v30  ;;  %v2119_v30 = vor.u32 %v2863_v20, %v2116_v21  ;;  %v1927_v20 = vor.u32 %v2815_v7, %v1924_v9  ;;  %v3003_v21 = vld [vmem:[%s4407_s1 + $0x5ec] sm:$0xf]  ;;  %v2551_v28 = vor.u32 %v2971_v17, %v2548_v18  ;;  %v2356_v7 = vld [vmem:[%s4407_s1 + $0x378] sm:$0xf0] }
  0x80   :  { %v2923_v4 = vld [vmem:[%s4407_s1 + $0x36c] sm:$0xf]  ;;  %v2484_v9 = vld [vmem:[%s4407_s1 + $0x478] sm:$0xf0] }
  0x81   :  { %1393 = vmatpush.bf16.msrb.mxu0 %v1923_v38  ;;  %1407 = vmatpush.bf16.msrb.mxu1 %v2051_v43  ;;  %v2611_v38 = vor.u32 %v2989_v31, %v2610_v29  ;;  %v2594_v43 = vld [vmem:[%s4407_s1 + $0x548] sm:$0xf]  ;;  %v2903_v29 = vld [vmem:[%s4407_s1 + $0x2cc] sm:$0xf] }
  0x82   :  { %1421 = vmatpush.bf16.msrb.mxu2 %v2179_v44  ;;  %v2103_v44 = vor.u32 %v2859_v34, %v2100_v36  ;;  %v2595_v51 = vor.u32 %v2985_v45, %v2594_v43  ;;  %v2935_v31 = vld [vmem:[%s4407_s1 + $0x3cc] sm:$0xf]  ;;  %v2532_v36 = vld [vmem:[%s4407_s1 + $0x4d8] sm:$0xf0] }
  0x83   :  { %1435 = vmatpush.bf16.msrb.mxu3 %v2307_v47  ;;  %v1956_v47 = vld [vmem:[%s4407_s1 + $0x58] sm:$0xf0]  ;;  %v2967_v34 = vld [vmem:[%s4407_s1 + $0x4cc] sm:$0xf] }
  0x84   :  { %1394 = vmatmul.bf16.vlgmr.msrb.gmra.mxu0 %v3321_v57  ;;  %1408 = vmatmul.bf16.vlgmr.msrb.gmra.mxu1 %v3351_v6  ;;  %v1959_v52 = vor.u32 %v2823_v46, %v1956_v47  ;;  %v2899_v43 = vld [vmem:[%s4407_s1 + $0x2ac] sm:$0xf]  ;;  %v2388_v47 = vld [vmem:[%s4407_s1 + $0x3b8] sm:$0xf0] }
  0x85   :  { %1442 = vmatpush.bf16.msra.mxu0 %v2547_v48  ;;  %1456 = vmatpush.bf16.msra.mxu1 %v2675_v49  ;;  %v2855_v48 = vld [vmem:[%s4407_s1 + $0x14c] sm:$0xf]  ;;  %v2084_v49 = vld [vmem:[%s4407_s1 + $0x158] sm:$0xf0] }
  0x86   :  { %1470 = vmatpush.bf16.msra.mxu2 %v2039_v50  ;;  %1436 = vmatmul.bf16.vlgmr.msrb.gmra.mxu3 %v3389_v23  ;;  %v2467_v50 = vor.u32 %v2953_v42, %v2466_v41  ;;  %v2087_v56 = vor.u32 %v2855_v48, %v2084_v49  ;;  %v2407_v41 = vor.u32 %v2935_v31, %v2404_v33  ;;  %v2931_v45 = vld [vmem:[%s4407_s1 + $0x3ac] sm:$0xf]  ;;  %v2516_v49 = vld [vmem:[%s4407_s1 + $0x4b8] sm:$0xf0] }
  0x87   :  { %1484 = vmatpush.bf16.msra.mxu3 %v2167_v54  ;;  %1422 = vmatmul.bf16.vlgmr.msrb.gmra.mxu2 %v3387_v22  ;;  %v2949_v54 = vld [vmem:[%s4407_s1 + $0x434] sm:$0xf0]  ;;  %v2535_v42 = vor.u32 %v2967_v34, %v2532_v36  ;;  %v2963_v48 = vld [vmem:[%s4407_s1 + $0x4ac] sm:$0xf]  ;;  %v2196_v31 = vld [vmem:[%s4407_s1 + $0x238] sm:$0xf0] }
  0x88   :  { %v2919_v17 = vld [vmem:[%s4407_s1 + $0x34c] sm:$0xf]  ;;  %v2324_v34 = vld [vmem:[%s4407_s1 + $0x338] sm:$0xf0] }
  0x89   :  { %1443 = vmatpush.bf16.msra.mxu0 %v2531_v61  ;;  %1457 = vmatpush.bf16.msra.mxu1 %v2659_v62  ;;  %v2851_v61 = vld [vmem:[%s4407_s1 + $0x12c] sm:$0xf]  ;;  %v2068_v62 = vld [vmem:[%s4407_s1 + $0x138] sm:$0xf0] }
  0x8a   :  { %1471 = vmatpush.bf16.msra.mxu2 %v2023_v63  ;;  %v2451_v63 = vor.u32 %v2949_v54, %v2450_v53  ;;  %v2071_v8 = vor.u32 %v2851_v61, %v2068_v62  ;;  %v2391_v53 = vor.u32 %v2931_v45, %v2388_v47  ;;  %v2519_v54 = vor.u32 %v2963_v48, %v2516_v49  ;;  %v2991_v61 = vld [vmem:[%s4407_s1 + $0x58c] sm:$0xf]  ;;  %v2628_v62 = vld [vmem:[%s4407_s1 + $0x598] sm:$0xf0] }
  0x8b   :  { %1485 = vmatpush.bf16.msra.mxu3 %v2151_v3  ;;  %v1943_v3 = vor.u32 %v2819_v59, %v1940_v60  ;;  %v2959_v59 = vld [vmem:[%s4407_s1 + $0x48c] sm:$0xf]  ;;  %v2500_v60 = vld [vmem:[%s4407_s1 + $0x498] sm:$0xf0]  ;;  %v2631_v5 = vor.u32 %v2991_v61, %v2628_v62 }
  0x8c   :  { %v2503_v1 = vor.u32 %v2959_v59, %v2500_v60  ;;  %v2947_v36 = vld [vmem:[%s4407_s1 + $0x42c] sm:$0xf]  ;;  %v2308_v49 = vld [vmem:[%s4407_s1 + $0x318] sm:$0xf0] }
  0x8d   :  { %1444 = vmatpush.bf16.msra.mxu0 %v2515_v10  ;;  %1458 = vmatpush.bf16.msra.mxu1 %v2643_v11  ;;  %v2847_v10 = vld [vmem:[%s4407_s1 + $0x10c] sm:$0xf]  ;;  %v2052_v11 = vld [vmem:[%s4407_s1 + $0x118] sm:$0xf0] }
  0x8e   :  { %1472 = vmatpush.bf16.msra.mxu2 %v2007_v12  ;;  %v2907_v12 = vld [vmem:[%s4407_s1 + $0x2ec] sm:$0xf] }
  0x8f   :  { %1486 = vmatpush.bf16.msra.mxu3 %v2135_v16  ;;  %v2420_v16 = vld [vmem:[%s4407_s1 + $0x3f8] sm:$0xf0]  ;;  %v2879_v45 = vld [vmem:[%s4407_s1 + $0x20c] sm:$0xf] }
  0x90   :  { %v2423_v27 = vor.u32 %v2939_v14, %v2420_v16  ;;  %v2212_v16 = vld [vmem:[%s4407_s1 + $0x258] sm:$0xf0]  ;;  %v2911_v47 = vld [vmem:[%s4407_s1 + $0x30c] sm:$0xf] }
  0x91   :  { %1445 = vmatpush.bf16.msra.mxu0 %v2499_v24  ;;  %1459 = vmatpush.bf16.msra.mxu1 %v2627_v25  ;;  %v2676_v24 = vld [vmem:[%s4407_s1 + $0x5f8] sm:$0xf0]  ;;  %v2055_v25 = vor.u32 %v2847_v10, %v2052_v11  ;;  %v2987_v10 = vld [vmem:[%s4407_s1 + $0x56c] sm:$0xf] }
  0x92   :  { %1473 = vmatpush.bf16.msra.mxu2 %v1991_v26  ;;  %v2295_v26 = vor.u32 %v2907_v12, %v2292_v13  ;;  %v2679_v32 = vor.u32 %v3003_v21, %v2676_v24  ;;  %v2612_v11 = vld [vmem:[%s4407_s1 + $0x578] sm:$0xf0]  ;;  %v2359_v13 = vor.u32 %v2923_v4, %v2356_v7  ;;  %v2983_v24 = vld [vmem:[%s4407_s1 + $0x54c] sm:$0xf]  ;;  %v3020_v4 = vld [vmem:[%s4410_s3 + $0x70] sm:$0xff] }
  0x93   :  { %1487 = vmatpush.bf16.msra.mxu3 %v2119_v30  ;;  %v2276_v30 = vld [vmem:[%s4407_s1 + $0x2d8] sm:$0xf0]  ;;  %v2615_v18 = vor.u32 %v2987_v10, %v2612_v11 }
  0x94   :  { %v2468_v21 = vld [vmem:[%s4407_s1 + $0x458] sm:$0xf0] }
  0x95   :  { %1446 = vmatpush.bf16.msra.mxu0 %v2483_v37  ;;  %1460 = vmatpush.bf16.msra.mxu1 %v2611_v38  ;;  %v2999_v37 = vld [vmem:[%s4407_s1 + $0x5cc] sm:$0xf]  ;;  %v2660_v38 = vld [vmem:[%s4407_s1 + $0x5d8] sm:$0xf0] }
  0x96   :  { %1474 = vmatpush.bf16.msra.mxu2 %v1975_v40  ;;  %v2279_v40 = vor.u32 %v2903_v29, %v2276_v30  ;;  %v2663_v46 = vor.u32 %v2999_v37, %v2660_v38  ;;  %v2883_v30 = vld [vmem:[%s4407_s1 + $0x22c] sm:$0xf]  ;;  %v2452_v37 = vld [vmem:[%s4407_s1 + $0x438] sm:$0xf0] }
  0x97   :  { %1488 = vmatpush.bf16.msra.mxu3 %v2103_v44  ;;  %v2260_v44 = vld [vmem:[%s4407_s1 + $0x2b8] sm:$0xf0] }
  0x99   :  { %1447 = vmatpush.bf16.msra.mxu0 %v2467_v50  ;;  %1461 = vmatpush.bf16.msra.mxu1 %v2595_v51  ;;  %v2995_v50 = vld [vmem:[%s4407_s1 + $0x5ac] sm:$0xf]  ;;  %v2644_v51 = vld [vmem:[%s4407_s1 + $0x5b8] sm:$0xf0] }
  0x9a   :  { %1475 = vmatpush.bf16.msra.mxu2 %v1959_v52  ;;  %v2263_v52 = vor.u32 %v2899_v43, %v2260_v44  ;;  %v2647_v58 = vor.u32 %v2995_v50, %v2644_v51  ;;  %v2455_v44 = vor.u32 %v2947_v36, %v2452_v37  ;;  %v2943_v50 = vld [vmem:[%s4407_s1 + $0x40c] sm:$0xf]  ;;  %v2436_v51 = vld [vmem:[%s4407_s1 + $0x418] sm:$0xf0]  ;;  %v3014_v36 = vld [vmem:[%s4410_s3 + $0x40] sm:$0xff] }
  0x9b   :  { %1489 = vmatpush.bf16.msra.mxu3 %v2087_v56  ;;  %v2927_v56 = vld [vmem:[%s4407_s1 + $0x38c] sm:$0xf] }
  0x9d   :  { %1448 = vmatpush.bf16.msra.mxu0 %v2451_v63  ;;  %1462 = vmatpush.bf16.msra.mxu1 %v2579_v2  ;;  %v2891_v2 = vld [vmem:[%s4407_s1 + $0x26c] sm:$0xf] }
  0x9e   :  { %1476 = vmatpush.bf16.msra.mxu2 %v1943_v3  ;;  %v2228_v3 = vld [vmem:[%s4407_s1 + $0x278] sm:$0xf0] }
  0x9f   :  { %1490 = vmatpush.bf16.msra.mxu3 %v2071_v8  ;;  %v2955_v8 = vld [vmem:[%s4407_s1 + $0x46c] sm:$0xf]  ;;  %v2231_v12 = vor.u32 %v2891_v2, %v2228_v3 }
  0xa0   :  { %v2487_v14 = vor.u32 %v2955_v8, %v2484_v9  ;;  %v3019_v9 = vld [vmem:[%s4410_s3 + $0x68] sm:$0xff] }
  0xa1   :  { %1449 = vmatpush.bf16.msra.mxu0 %v2435_v15  ;;  %1463 = vmatpush.bf16.msra.mxu1 %v2563_v19  ;;  %v2887_v15 = vld [vmem:[%s4407_s1 + $0x24c] sm:$0xf]  ;;  %v2340_v19 = vld [vmem:[%s4407_s1 + $0x358] sm:$0xf0]  ;;  %v1241_v38 = vpop.f32.mrf.mxu1 }
  0xa2   :  { %1477 = vmatpush.bf16.msra.mxu2 %v1927_v20  ;;  %v2951_v20 = vld [vmem:[%s4407_s1 + $0x44c] sm:$0xf] }
  0xa3   :  { %1491 = vmatpush.bf16.msra.mxu3 %v2055_v25  ;;  %v2596_v25 = vld [vmem:[%s4407_s1 + $0x558] sm:$0xf0] }
  0xa4   :  { %1450 = vmatmul.bf16.vlgmr.msra.gmra.mxu0 %v3534_v35  ;;  %1464 = vmatmul.bf16.vlgmr.msra.gmra.mxu1 %v3545_v39  ;;  %v2599_v33 = vor.u32 %v2983_v24, %v2596_v25  ;;  %v3016_v24 = vld [vmem:[%s4410_s3 + $0x50] sm:$0xff] }
  0xa5   :  { %1498 = vmatpush.bf16.msrb.mxu0 %v2295_v26  ;;  %1512 = vmatpush.bf16.msrb.mxu1 %v2423_v27  ;;  %v2215_v26 = vor.u32 %v2887_v15, %v2212_v16  ;;  %v2343_v27 = vor.u32 %v2919_v17, %v2340_v19  ;;  %v1227_v29 = vpop.f32.mrf.mxu0  ;;  %v3008_v19 = vld [vmem:[%s4410_s3 + $0x10] sm:$0xff] }
  0xa6   :  { %1526 = vmatpush.bf16.msrb.mxu2 %v2551_v28  ;;  %1492 = vmatmul.bf16.vlgmr.msra.gmra.mxu3 %v3351_v6  ;;  %v2372_v6 = vld [vmem:[%s4407_s1 + $0x398] sm:$0xf0]  ;;  %v2471_v28 = vor.u32 %v2951_v20, %v2468_v21 }
  0xa7   :  { %1540 = vmatpush.bf16.msrb.mxu3 %v2679_v32  ;;  %1478 = vmatmul.bf16.vlgmr.msra.gmra.mxu2 %v3321_v57  ;;  %v2895_v57 = vld [vmem:[%s4407_s1 + $0x28c] sm:$0xf]  ;;  %v2375_v0 = vor.u32 %v2927_v56, %v2372_v6  ;;  %v2439_v56 = vor.u32 %v2943_v50, %v2436_v51  ;;  %v3013_v6 = vld [vmem:[%s4410_s3 + $0x38] sm:$0xff] }
  0xa8   :  { %v2247_v63 = vor.u32 %v2895_v57, %v2244_v55  ;;  %v2915_v32 = vld [vmem:[%s4407_s1 + $0x32c] sm:$0xf]  ;;  %v2311_v55 = vor.u32 %v2911_v47, %v2308_v49 }
  0xa9   :  { %1499 = vmatpush.bf16.msrb.mxu0 %v2279_v40  ;;  %1513 = vmatpush.bf16.msrb.mxu1 %v2407_v41  ;;  %v2979_v40 = vld [vmem:[%s4407_s1 + $0x52c] sm:$0xf]  ;;  %v2580_v41 = vld [vmem:[%s4407_s1 + $0x538] sm:$0xf0]  ;;  %v2327_v43 = vor.u32 %v2915_v32, %v2324_v34  ;;  %v1243_v62 = vpop.f32.mrf.mxu1 }
  0xaa   :  { %1527 = vmatpush.bf16.msrb.mxu2 %v2535_v42  ;;  %v2199_v42 = vor.u32 %v2883_v30, %v2196_v31  ;;  %v2583_v48 = vor.u32 %v2979_v40, %v2580_v41  ;;  %v3006_v30 = vld [vmem:[%s4410_s3] sm:$0xff] }
  0xab   :  { %1541 = vmatpush.bf16.msrb.mxu3 %v2663_v46  ;;  %v2180_v46 = vld [vmem:[%s4407_s1 + $0x218] sm:$0xf0] }
  0xac   :  { %v2183_v57 = vor.u32 %v2879_v45, %v2180_v46  ;;  %v3029_v46 = vld [vmem:[%s4410_s3 + $0xb8] sm:$0xff] }
  0xad   :  { %1500 = vmatpush.bf16.msrb.mxu0 %v2263_v52  ;;  %1514 = vmatpush.bf16.msrb.mxu1 %v2391_v53  ;;  %v2975_v52 = vld [vmem:[%s4407_s1 + $0x50c] sm:$0xf]  ;;  %v2564_v53 = vld [vmem:[%s4407_s1 + $0x518] sm:$0xf0]  ;;  %v1229_v61 = vpop.f32.mrf.mxu0 }
  0xae   :  { %1528 = vmatpush.bf16.msrb.mxu2 %v2519_v54  ;;  %v4292_v54 = vld [vmem:[%s4409_s2] sm:$0xf] }
  0xaf   :  { %1542 = vmatpush.bf16.msrb.mxu3 %v2647_v58  ;;  %v2567_v58 = vor.u32 %v2975_v52, %v2564_v53  ;;  %v220_v60 = vperm.slane %v4292_v54, 0 }
  0xb1   :  { %1501 = vmatpush.bf16.msrb.mxu0 %v2247_v63  ;;  %1515 = vmatpush.bf16.msrb.mxu1 %v2375_v0  ;;  %v3021_v63 = vld [vmem:[%s4410_s3 + $0x78] sm:$0xff]  ;;  %v3012_v0 = vld [vmem:[%s4410_s3 + $0x30] sm:$0xff]  ;;  %v1228_v2 = vadd.f32 %v1227_v29, %v220_v60  ;;  %v1230_v3 = vadd.f32 %v1229_v61, %v220_v60  ;;  %v3015_v29 = vld [vmem:[%s4410_s3 + $0x48] sm:$0xff] }
  0xb2   :  { %1529 = vmatpush.bf16.msrb.mxu2 %v2503_v1  ;;  %v1255_v59 = vpop.f32.mrf.mxu2  ;;  %v1269_v1 = vpop.f32.mrf.mxu3 }
  0xb3   :  { %1543 = vmatpush.bf16.msrb.mxu3 %v2631_v5  ;;  %v3011_v5 = vld [vmem:[%s4410_s3 + $0x28] sm:$0xff]  ;;  %v1242_v7 = vadd.f32 %v1241_v38, %v1228_v2  ;;  %v1244_v8 = vadd.f32 %v1243_v62, %v1230_v3  ;;  %v221_v38 = vperm.slane %v4292_v54, 1 }
  0xb5   :  { %1502 = vmatpush.bf16.msrb.mxu0 %v2231_v12  ;;  %1516 = vmatpush.bf16.msrb.mxu1 %v2359_v13  ;;  %v3018_v12 = vld [vmem:[%s4410_s3 + $0x60] sm:$0xff] }
  0xb6   :  { %1530 = vmatpush.bf16.msrb.mxu2 %v2487_v14  ;;  %v3009_v14 = vld [vmem:[%s4410_s3 + $0x18] sm:$0xff] }
  0xb7   :  { %1544 = vmatpush.bf16.msrb.mxu3 %v2615_v18  ;;  %v3017_v18 = vld [vmem:[%s4410_s3 + $0x58] sm:$0xff] }
  0xb9   :  { %1503 = vmatpush.bf16.msrb.mxu0 %v2215_v26  ;;  %1517 = vmatpush.bf16.msrb.mxu1 %v2343_v27  ;;  %v3007_v26 = vld [vmem:[%s4410_s3 + $0x8] sm:$0xff] }
  0xba   :  { %1531 = vmatpush.bf16.msrb.mxu2 %v2471_v28  ;;  %v1271_v13 = vpop.f32.mrf.mxu3 }
  0xbb   :  { %1545 = vmatpush.bf16.msrb.mxu3 %v2599_v33 }
  0xbd   :  { %1504 = vmatpush.bf16.msrb.mxu0 %v2199_v42  ;;  %1518 = vmatpush.bf16.msrb.mxu1 %v2327_v43 }
  0xbe   :  { %1532 = vmatpush.bf16.msrb.mxu2 %v2455_v44 }
  0xbf   :  { %1546 = vmatpush.bf16.msrb.mxu3 %v2583_v48  ;;  %v3028_v48 = vld [vmem:[%s4410_s3 + $0xb0] sm:$0xff] }
  0xc1   :  { %1505 = vmatpush.bf16.msrb.mxu0 %v2183_v57  ;;  %1519 = vmatpush.bf16.msrb.mxu1 %v2311_v55  ;;  %v1283_v10 = vpop.f32.mrf.mxu0  ;;  %v3027_v55 = vld [vmem:[%s4410_s3 + $0xa8] sm:$0xff] }
  0xc2   :  { %1533 = vmatpush.bf16.msrb.mxu2 %v2439_v56 }
  0xc3   :  { %1547 = vmatpush.bf16.msrb.mxu3 %v2567_v58 }
  0xc4   :  { %1506 = vmatmul.bf16.vlgmr.msrb.gmra.mxu0 %v3387_v22  ;;  %1520 = vmatmul.bf16.vlgmr.msrb.gmra.mxu1 %v3389_v23  ;;  %v1257_v22 = vpop.f32.mrf.mxu2  ;;  %v3010_v23 = vld [vmem:[%s4410_s3 + $0x20] sm:$0xff] }
  0xc5   :  { %1826 = vmatpush.bf16.msra.mxu0 %v3013_v6  ;;  %1840 = vmatpush.bf16.msra.mxu1 %v3021_v63  ;;  %v1258_v11 = vadd.f32 %v1257_v22, %v1244_v8  ;;  %v3026_v6 = vld [vmem:[%s4410_s3 + $0xa0] sm:$0xff]  ;;  %v3023_v8 = vld [vmem:[%s4410_s3 + $0x88] sm:$0xff] }
  0xc6   :  { %1534 = vmatmul.bf16.vlgmr.msrb.gmra.mxu2 %v3534_v35  ;;  %1548 = vmatmul.bf16.vlgmr.msrb.gmra.mxu3 %v3545_v39  ;;  %v1297_v35 = vpop.f32.mrf.mxu1  ;;  %v1256_v39 = vadd.f32 %v1255_v59, %v1242_v7  ;;  %v3024_v7 = vld [vmem:[%s4410_s3 + $0x90] sm:$0xff] }
  0xc7   :  { %v1272_v16 = vadd.f32 %v1271_v13, %v1258_v11  ;;  %1854 = vmatpush.bf16.msra.mxu2 %v3029_v46 }
  0xc8   :  { %v1270_v15 = vadd.f32 %v1269_v1, %v1256_v39 }
  0xc9   :  { %1827 = vmatpush.bf16.msra.mxu0 %v3012_v0  ;;  %1841 = vmatpush.bf16.msra.mxu1 %v3020_v4  ;;  %v1285_v17 = vpop.f32.mrf.mxu0  ;;  %v1325_v34 = vpop.f32.mrf.mxu3 }
  0xca   :  { %v1284_v20 = vadd.f32 %v1283_v10, %v1270_v15  ;;  %v1286_v21 = vadd.f32 %v1285_v17, %v1272_v16  ;;  %v3022_v10 = vld [vmem:[%s4410_s3 + $0x80] sm:$0xff] }
  0xcb   :  { %1855 = vmatpush.bf16.msra.mxu2 %v3028_v48  ;;  %v223_v48 = vperm.slane %v4292_v54, 3 }
  0xcc   :  { %v1298_v27 = vadd.f32 %v1297_v35, %v1284_v20  ;;  %v1311_v31 = vpop.f32.mrf.mxu2  ;;  %v3037_v35 = vld [vmem:[%s4410_s3 + $0xf8] sm:$0xff]  ;;  %v3035_v20 = vld [vmem:[%s4410_s3 + $0xe8] sm:$0xff] }
  0xcd   :  { %1828 = vmatpush.bf16.msra.mxu0 %v3011_v5  ;;  %1842 = vmatpush.bf16.msra.mxu1 %v3019_v9  ;;  %v1312_v40 = vadd.f32 %v1311_v31, %v221_v38  ;;  %v3025_v5 = vld [vmem:[%s4410_s3 + $0x98] sm:$0xff] }
  0xce   :  { %v1299_v25 = vpop.f32.mrf.mxu1  ;;  %v1554_v32 = vmax.f32 %v1298_v27, 0.0  ;;  %1868 = vmatpush.bf16.msra.mxu3 %v3037_v35 }
  0xcf   :  { %v1300_v28 = vadd.f32 %v1299_v25, %v1286_v21  ;;  %v1326_v43 = vadd.f32 %v1325_v34, %v1312_v40  ;;  %1856 = vmatpush.bf16.msra.mxu2 %v3027_v55 }
  0xd1   :  { %1829 = vmatpush.bf16.msra.mxu0 %v3010_v23  ;;  %1843 = vmatpush.bf16.msra.mxu1 %v3018_v12  ;;  %v1558_v33 = vmax.f32 %v1300_v28, 0.0  ;;  %v1327_v42 = vpop.f32.mrf.mxu3  ;;  %v222_v23 = vperm.slane %v4292_v54, 2  ;;  %v3036_v12 = vld [vmem:[%s4410_s3 + $0xf0] sm:$0xff] }
  0xd2   :  { %1869 = vmatpush.bf16.msra.mxu3 %v3036_v12 }
  0xd3   :  { %v1562_v37 = vpack.c.bf16 %v1558_v33, %v1554_v32  ;;  %1857 = vmatpush.bf16.msra.mxu2 %v3026_v6  ;;  %v3033_v32 = vld [vmem:[%s4410_s3 + $0xd8] sm:$0xff] }
  0xd4   :  { %v1313_v41 = vpop.f32.mrf.mxu2 }
  0xd5   :  { %1830 = vmatpush.bf16.msra.mxu0 %v3009_v14  ;;  %1844 = vmatpush.bf16.msra.mxu1 %v3017_v18  ;;  %v1314_v47 = vadd.f32 %v1313_v41, %v221_v38  ;;  %v3032_v38 = vld [vmem:[%s4410_s3 + $0xd0] sm:$0xff] }
  0xd6   :  { %1870 = vmatpush.bf16.msra.mxu3 %v3035_v20 }
  0xd7   :  { %v1328_v50 = vadd.f32 %v1327_v42, %v1314_v47  ;;  %1858 = vmatpush.bf16.msra.mxu2 %v3025_v5 }
  0xd9   :  { %1831 = vmatpush.bf16.msra.mxu0 %v3008_v19  ;;  %1845 = vmatpush.bf16.msra.mxu1 %v3016_v24 }
  0xdb   :  { %1859 = vmatpush.bf16.msra.mxu2 %v3024_v7 }
  0xdd   :  { %1832 = vmatpush.bf16.msra.mxu0 %v3007_v26  ;;  %1846 = vmatpush.bf16.msra.mxu1 %v3015_v29  ;;  %v3034_v26 = vld [vmem:[%s4410_s3 + $0xe0] sm:$0xff] }
  0xde   :  { %1871 = vmatpush.bf16.msra.mxu3 %v3034_v26 }
  0xdf   :  { %1860 = vmatpush.bf16.msra.mxu2 %v3023_v8 }
  0xe1   :  { %1833 = vmatpush.bf16.msra.mxu0 %v3006_v30  ;;  %1847 = vmatpush.bf16.msra.mxu1 %v3014_v36  ;;  %v1339_v44 = vpop.f32.mrf.mxu0  ;;  %v1353_v45 = vpop.f32.mrf.mxu1 }
  0xe2   :  { %v1340_v49 = vadd.f32 %v1339_v44, %v1326_v43  ;;  %1872 = vmatpush.bf16.msra.mxu3 %v3033_v32  ;;  %v3031_v43 = vld [vmem:[%s4410_s3 + $0xc8] sm:$0xff] }
  0xe3   :  { %1861 = vmatpush.bf16.msra.mxu2 %v3022_v10  ;;  %v3038_v10 = vld [vmem:[%s4411_s4] ss:$0 sm:$0xff] }
  0xe4   :  { %1834 = vmatmul.bf16.vlgmr.msra.gmra.mxu0 %v1562_v37  ;;  %v1354_v52 = vadd.f32 %v1353_v45, %v1340_v49  ;;  %v3030_v45 = vld [vmem:[%s4410_s3 + $0xc0] sm:$0xff] }
  0xe6   :  { %1873 = vmatpush.bf16.msra.mxu3 %v3032_v38 }
  0xe9   :  { %v1341_v53 = vpop.f32.mrf.mxu0  ;;  %v1381_v57 = vpop.f32.mrf.mxu3 }
  0xea   :  { %v1367_v51 = vpop.f32.mrf.mxu2  ;;  %v1342_v56 = vadd.f32 %v1341_v53, %v1328_v50  ;;  %v1355_v58 = vpop.f32.mrf.mxu1  ;;  %1874 = vmatpush.bf16.msra.mxu3 %v3031_v43 }
  0xeb   :  { %v1368_v59 = vadd.f32 %v1367_v51, %v1354_v52 }
  0xec   :  { %v1356_v60 = vadd.f32 %v1355_v58, %v1342_v56 }
  0xed   :  { %v1382_v62 = vadd.f32 %v1381_v57, %v1368_v59 }
  0xee   :  { %1875 = vmatpush.bf16.msra.mxu3 %v3030_v45 }
  0xef   :  { %v1555_v2 = vmax.f32 %v1382_v62, 0.0 }
  0xf1   :  { %v1383_v0 = vpop.f32.mrf.mxu3 }
  0xf2   :  { %v1369_v61 = vpop.f32.mrf.mxu2 }
  0xf3   :  { %v1370_v63 = vadd.f32 %v1369_v61, %v1356_v60 }
  0xf5   :  { %v1384_v1 = vadd.f32 %v1383_v0, %v1370_v63 }
  0xf7   :  { %v1559_v3 = vmax.f32 %v1384_v1, 0.0 }
  0xf9   :  { %v1563_v4 = vpack.c.bf16 %v1559_v3, %v1555_v2 }
  0xfb   :  { %1848 = vmatmul.bf16.vlgmr.msra.gmra.mxu1 %v1563_v4 }
 0x101   :  { %v1395_v22 = vpop.f32.mrf.mxu0  ;;  %v1409_v9 = vpop.f32.mrf.mxu1 }
 0x102   :  { %v1396_v39 = vadd.f32 %v1395_v22, %v222_v23 }
 0x104   :  { %v1410_v14 = vadd.f32 %v1409_v9, %v1396_v39 }
 0x109   :  { %v1397_v13 = vpop.f32.mrf.mxu0  ;;  %v1411_v15 = vpop.f32.mrf.mxu1 }
 0x10a   :  { %v1423_v11 = vpop.f32.mrf.mxu2  ;;  %v1437_v16 = vpop.f32.mrf.mxu3  ;;  %v1398_v17 = vadd.f32 %v1397_v13, %v222_v23 }
 0x10b   :  { %v1424_v18 = vadd.f32 %v1423_v11, %v1410_v14 }
 0x10c   :  { %v1412_v19 = vadd.f32 %v1411_v15, %v1398_v17 }
 0x10d   :  { %v1438_v24 = vadd.f32 %v1437_v16, %v1424_v18 }
 0x112   :  { %v1425_v21 = vpop.f32.mrf.mxu2  ;;  %v1439_v29 = vpop.f32.mrf.mxu3 }
 0x113   :  { %v1426_v28 = vadd.f32 %v1425_v21, %v1412_v19 }
 0x115   :  { %v1440_v31 = vadd.f32 %v1439_v29, %v1426_v28 }
 0x121   :  { %v1451_v25 = vpop.f32.mrf.mxu0  ;;  %v1465_v27 = vpop.f32.mrf.mxu1 }
 0x122   :  { %v1452_v30 = vadd.f32 %v1451_v25, %v1438_v24 }
 0x124   :  { %v1466_v33 = vadd.f32 %v1465_v27, %v1452_v30 }
 0x126   :  { %v1556_v40 = vmax.f32 %v1466_v33, 0.0 }
 0x129   :  { %v1453_v34 = vpop.f32.mrf.mxu0  ;;  %v1467_v37 = vpop.f32.mrf.mxu1 }
 0x12a   :  { %v1454_v36 = vadd.f32 %v1453_v34, %v1440_v31  ;;  %v1479_v46 = vpop.f32.mrf.mxu2  ;;  %v1493_v47 = vpop.f32.mrf.mxu3 }
 0x12b   :  { %v1480_v50 = vadd.f32 %v1479_v46, %v223_v48 }
 0x12c   :  { %v1468_v41 = vadd.f32 %v1467_v37, %v1454_v36 }
 0x12d   :  { %v1494_v57 = vadd.f32 %v1493_v47, %v1480_v50 }
 0x12e   :  { %v1560_v42 = vmax.f32 %v1468_v41, 0.0 }
 0x130   :  { %v1564_v44 = vpack.c.bf16 %v1560_v42, %v1556_v40 }
 0x132   :  { %1862 = vmatmul.bf16.vlgmr.msra.gmra.mxu2 %v1564_v44  ;;  %v1481_v49 = vpop.f32.mrf.mxu2  ;;  %v1495_v51 = vpop.f32.mrf.mxu3 }
 0x133   :  { %v1482_v55 = vadd.f32 %v1481_v49, %v223_v48 }
 0x135   :  { %v1496_v6 = vadd.f32 %v1495_v51, %v1482_v55 }
 0x141   :  { %v1507_v52 = vpop.f32.mrf.mxu0  ;;  %v1521_v53 = vpop.f32.mrf.mxu1 }
 0x142   :  { %v1508_v56 = vadd.f32 %v1507_v52, %v1494_v57 }
 0x144   :  { %v1522_v61 = vadd.f32 %v1521_v53, %v1508_v56 }
 0x149   :  { %v1535_v58 = vpop.f32.mrf.mxu2  ;;  %v1549_v59 = vpop.f32.mrf.mxu3 }
 0x14a   :  { %v1509_v60 = vpop.f32.mrf.mxu0  ;;  %v1536_v63 = vadd.f32 %v1535_v58, %v1522_v61  ;;  %v1523_v0 = vpop.f32.mrf.mxu1 }
 0x14b   :  { %v1510_v62 = vadd.f32 %v1509_v60, %v1496_v6 }
 0x14c   :  { %v1550_v3 = vadd.f32 %v1549_v59, %v1536_v63 }
 0x14d   :  { %v1524_v1 = vadd.f32 %v1523_v0, %v1510_v62 }
 0x14e   :  { %v1557_v7 = vmax.f32 %v1550_v3, 0.0 }
 0x151   :  { %v1537_v2 = vpop.f32.mrf.mxu2  ;;  %v1551_v4 = vpop.f32.mrf.mxu3 }
 0x152   :  { %v1538_v54 = vadd.f32 %v1537_v2, %v1524_v1 }
 0x154   :  { %v1552_v5 = vadd.f32 %v1551_v4, %v1538_v54 }
 0x156   :  { %v1561_v8 = vmax.f32 %v1552_v5, 0.0 }
 0x158   :  { %v1565_v22 = vpack.c.bf16 %v1561_v8, %v1557_v7 }
 0x15a   :  { %1876 = vmatmul.bf16.vlgmr.msra.gmra.mxu3 %v1565_v22 }
 0x161   :  { %v1835_v9 = vpop.f32.mrf.mxu0 }
 0x162   :  { %v1836_v39 = vadd.f32 %v3038_v10, %v1835_v9 }
 0x169   :  { %v1837_v13 = vpop.f32.mrf.mxu0 }
 0x16a   :  { %v1838_v17 = vadd.f32 %v3038_v10, %v1837_v13 }
 0x178   :  { %v1849_v23 = vpop.f32.mrf.mxu1 }
 0x179   :  { %v1850_v11 = vadd.f32 %v1849_v23, %v1836_v39 }
 0x180   :  { %v1851_v16 = vpop.f32.mrf.mxu1 }
 0x181   :  { %v1852_v19 = vadd.f32 %v1851_v16, %v1838_v17 }
 0x1b5   :  { %v1863_v35 = vpop.f32.mrf.mxu2 }
 0x1b6   :  { %v1864_v12 = vadd.f32 %v1863_v35, %v1850_v11 }
 0x1bd   :  { %v1865_v18 = vpop.f32.mrf.mxu2 }
 0x1be   :  { %v1866_v20 = vadd.f32 %v1865_v18, %v1852_v19 }
 0x1dd   :  { %v1877_v14 = vpop.f32.mrf.mxu3 }
 0x1de   :  { %v1878_v15 = vadd.f32 %v1877_v14, %v1864_v12 }
 0x1e0   :  { %1882 = vst [vmem:[%s4412_s5] sm:$0xff] %v1878_v15 }
 0x1e5   :  { %v1879_v21 = vpop.f32.mrf.mxu3 }
 0x1e6   :  { %v1880_v24 = vadd.f32 %v1879_v21, %v1866_v20 }
 0x1e8   :  { %1883 = vst [vmem:[%s4412_s5 + $0x8] sm:$0xff] %v1880_v24 }

</bundles_post_ra>
